<compile_context>
chip_gen: v6e
topology: v6e:2x2x1
jax: 0.10.0
libtpu: 0.0.40
codegen_flags: <defaults>
</compile_context>

<pallas_src>
import functools

import jax
import jax.numpy as jnp
from jax import lax
from jax.experimental import pallas as pl
from jax.experimental.pallas import tpu as pltpu

# RealWorldHAR options (hard-coded from the dataset config).
NUM_MODALITIES = 5                    # => modality_type == 'acc_gyro_6axes'
C_IN, C1, C2, C3 = 6, 32, 64, 96      # channel dims of the conv stack
C_IN_PAD = 16                         # layer-1 channels padded to a bf16 sublane tile
K1, K2, K3 = 24, 16, 8                # kernel sizes of the conv stack
RF = K1 + K2 + K3 - 3                 # total receptive-field shrink = 45


# ----------------------------- Pallas kernel --------------------------------
def _encoder_kernel(x_ref, w1_ref, b1_ref, w2_ref, b2_ref, w3_ref, b3_ref,
                    sel_ref, o_ref, *, seq_len):
    """One (modality, batch-block) grid step of the full encoder.

    x_ref  : (1, 1, 16, BB*T) bf16  channels on sublanes, BB*T on lanes
    wN_ref : (1, Cout, K*Cin) bf16  im2col-flattened conv weights
    bN_ref : (1, Cout, 1)     f32
    sel_ref: (BB*T-45, BB)    f32   one-hot column selector (lane j*T -> col j)
    o_ref  : (1, 1, 96, BB)   f32   pooled features, batch on lanes
    """
    x = x_ref[0, 0]                                          # (16, BB*T) bf16

    def conv_relu(inp, w_ref, b_ref, ksize, to_bf16):
        lout = inp.shape[1] - ksize + 1                      # 'VALID', stride 1
        # im2col unfold in bf16: K static lane-shifted slices stacked along
        # sublanes (sublane-tile aligned: 16 / 32 / 64 rows per slice).
        xu = jnp.concatenate([inp[:, k:k + lout] for k in range(ksize)], axis=0)
        # One big MXU matmul per layer: bf16 operands, f32 accumulation.
        y = jnp.dot(w_ref[0], xu, preferred_element_type=jnp.float32)
        # bias + ReLU in f32 (Dropout is identity at inference).
        y = jnp.maximum(y + b_ref[0], 0.0)
        return y.astype(jnp.bfloat16) if to_bf16 else y

    y = conv_relu(x, w1_ref, b1_ref, K1, True)               # (32, BB*T-23) bf16
    y = conv_relu(y, w2_ref, b2_ref, K2, True)               # (64, BB*T-38) bf16
    y = conv_relu(y, w3_ref, b3_ref, K3, False)              # (96, BB*T-45) f32

    # AdaptiveMaxPool1d(1) per batch element.
    # Shift-max tree: after it, lane j*T holds max over exactly the lvalid
    # valid output columns [j*T, j*T + lvalid) of batch j (cumulative shift
    # = lvalid-1 < T, so it never reaches segment j+1).
    lvalid = seq_len - RF
    cover = 1
    while cover < lvalid:
        s = min(cover, lvalid - cover)
        shifted = jnp.concatenate(
            [y[:, s:], jnp.zeros((C3, s), y.dtype)], axis=1)
        y = jnp.maximum(y, shifted)
        cover += s

    # Compact lanes {j*T} -> columns j with a one-hot f32 selection matmul
    # (exact: one 1.0 per column, all other products are exactly 0).
    o_ref[0, 0] = jnp.dot(y, sel_ref[...], preferred_element_type=jnp.float32)


# ------------------------------- wrapper -------------------------------------
def _choose_blocking(batch, seq_len, max_lanes):
    """Pick (BB, nb) with BB*seq_len <= max_lanes and minimal batch padding."""
    bb_cap = max(1, max_lanes // seq_len)
    nb = max(1, -(-batch // bb_cap))          # ceil(batch / bb_cap)
    bb = -(-batch // nb)                      # ceil(batch / nb)
    return bb, nb


def encoder_forward(x, w1f, b1s, w2f, b2s, w3f, b3s, *, avail_ids,
                    max_lanes=8192):
    """x: (B, 30, T) f32 -> list of (B, 96) f32, one per available modality."""
    B, C, T = x.shape
    assert C == 3 * NUM_MODALITIES * 2
    assert T >= RF + 1
    M = len(avail_ids)
    if M == 0:
        return []

    BB, nb = _choose_blocking(B, T, max_lanes)
    B_pad = BB * nb
    BBT = BB * T
    L1 = BBT - K1 + 1
    L2 = L1 - K2 + 1
    L3 = L2 - K3 + 1                                          # = BBT - RF

    # Gather acc+gyro channels per available modality, zero-pad batch to B_pad,
    # pad 6->16 channels, pack batch into the lane axis, cast to bf16:
    # one fused XLA pass -> (M, nb, 16, BB*T) bf16.
    parts = []
    for mid in avail_ids:
        acc = x[:, 3 * mid:3 * mid + 3, :]
        gyro = x[:, 3 * mid + 15:3 * mid + 18, :]
        parts.append(jnp.concatenate([acc, gyro], axis=1))    # (B, 6, T)
    xm = jnp.stack(parts, axis=0)                             # (M, B, 6, T)
    xm = jnp.pad(xm, ((0, 0), (0, B_pad - B), (0, C_IN_PAD - C_IN), (0, 0)))
    xm = xm.reshape(M, nb, BB, C_IN_PAD, T).transpose(0, 1, 3, 2, 4)
    xm = xm.reshape(M, nb, C_IN_PAD, BBT).astype(jnp.bfloat16)

    # One-hot lane selector (constant across the grid -> DMA'd once, VMEM
    # resident): sel[j*T, j] = 1.
    sel = (jnp.arange(L3)[:, None] == (jnp.arange(BB) * T)[None, :])
    sel = sel.astype(jnp.float32)                             # (L3, BB)

    flops = 2 * M * nb * (C1 * (K1 * C_IN_PAD) * L1
                          + C2 * (K2 * C1) * L2
                          + C3 * (K3 * C2) * L3
                          + C3 * L3 * BB)
    param_bytes = sum(a.size * a.dtype.itemsize
                      for a in (w1f, b1s, w2f, b2s, w3f, b3s))
    bytes_accessed = (xm.size * xm.dtype.itemsize + sel.size * 4
                      + param_bytes + M * nb * C3 * BB * 4)

    kernel = functools.partial(_encoder_kernel, seq_len=T)

    out = pl.pallas_call(
        kernel,
        out_shape=jax.ShapeDtypeStruct((M, nb, C3, BB), jnp.float32),
        grid=(M, nb),
        in_specs=[
            pl.BlockSpec((1, 1, C_IN_PAD, BBT), lambda m, b: (m, b, 0, 0)),
            pl.BlockSpec((1, C1, K1 * C_IN_PAD), lambda m, b: (m, 0, 0)),
            pl.BlockSpec((1, C1, 1), lambda m, b: (m, 0, 0)),
            pl.BlockSpec((1, C2, K2 * C1), lambda m, b: (m, 0, 0)),
            pl.BlockSpec((1, C2, 1), lambda m, b: (m, 0, 0)),
            pl.BlockSpec((1, C3, K3 * C2), lambda m, b: (m, 0, 0)),
            pl.BlockSpec((1, C3, 1), lambda m, b: (m, 0, 0)),
            pl.BlockSpec((L3, BB), lambda m, b: (0, 0)),
        ],
        out_specs=pl.BlockSpec((1, 1, C3, BB), lambda m, b: (m, b, 0, 0)),
        compiler_params=pltpu.CompilerParams(
            dimension_semantics=("parallel", "parallel"),
            vmem_limit_bytes=48 * 1024 * 1024),
        cost_estimate=pl.CostEstimate(
            flops=flops, transcendentals=0, bytes_accessed=bytes_accessed),
    )(xm, w1f, b1s, w2f, b2s, w3f, b3s, sel)

    out = out.transpose(0, 1, 3, 2).reshape(M, B_pad, C3)[:, :B]   # (M, B, 96)
    return [out[i] for i in range(M)]


# --------------------------- parameter handling -------------------------------
def _init_conv(kw, kb, cout, cin, ksize):
    # deterministic, PyTorch-style uniform(-1/sqrt(fan_in), 1/sqrt(fan_in))
    bound = 1.0 / float(cin * ksize) ** 0.5
    w = jax.random.uniform(kw, (cout, cin, ksize), jnp.float32, -bound, bound)
    b = jax.random.uniform(kb, (cout, 1), jnp.float32, -bound, bound)
    return w, b


def init_single_modal_params(key):
    ks = jax.random.split(key, 6)
    w1, b1 = _init_conv(ks[0], ks[1], C1, C_IN, K1)
    w2, b2 = _init_conv(ks[2], ks[3], C2, C1, K2)
    w3, b3 = _init_conv(ks[4], ks[5], C3, C2, K3)
    return (w1, b1, w2, b2, w3, b3)


def _stack_kernel_params(param_list):
    """Stack per-modality params; pre-flatten conv weights to the im2col
    (Cout, K*Cin) bf16 layout matching the kernel's unfold ordering
    (row index = k*Cin + c; layer-1 Cin zero-padded to 16)."""
    w1 = jnp.stack([p[0] for p in param_list])                # (M,32,6,24)
    w2 = jnp.stack([p[2] for p in param_list])                # (M,64,32,16)
    w3 = jnp.stack([p[4] for p in param_list])                # (M,96,64,8)
    b1 = jnp.stack([p[1] for p in param_list])                # (M,32,1)
    b2 = jnp.stack([p[3] for p in param_list])                # (M,64,1)
    b3 = jnp.stack([p[5] for p in param_list])                # (M,96,1)
    M = w1.shape[0]
    w1 = jnp.pad(w1, ((0, 0), (0, 0), (0, C_IN_PAD - C_IN), (0, 0)))
    w1f = jnp.transpose(w1, (0, 1, 3, 2)).reshape(M, C1, K1 * C_IN_PAD)
    w2f = jnp.transpose(w2, (0, 1, 3, 2)).reshape(M, C2, K2 * C1)
    w3f = jnp.transpose(w3, (0, 1, 3, 2)).reshape(M, C3, K3 * C2)
    return (w1f.astype(jnp.bfloat16), b1, w2f.astype(jnp.bfloat16), b2,
            w3f.astype(jnp.bfloat16), b3)


class DynamicEncoderPallas:
    """JAX/Pallas equivalent of Dynamic_Encoder (acc_gyro_6axes, 5 modalities)."""

    def __init__(self, modality_indices, key):
        assert len(modality_indices) == NUM_MODALITIES
        self.modality_indices = list(modality_indices)
        self.avail_ids = tuple(i for i, a in enumerate(modality_indices) if a)
        keys = jax.random.split(key, NUM_MODALITIES)
        self.params = [
            init_single_modal_params(keys[i]) if avail else None
            for i, avail in enumerate(modality_indices)
        ]
        self.kernel_params = (
            _stack_kernel_params([self.params[i] for i in self.avail_ids])
            if self.avail_ids else None)
        self._fwd = jax.jit(
            functools.partial(encoder_forward, avail_ids=self.avail_ids))

    def __call__(self, x):
        if not self.avail_ids:
            return []
        return self._fwd(x, *self.kernel_params)


# --------------------------- plain-JAX reference -----------------------------
def get_modality_input_realworld(x, modality_index):
    acc = x[:, 3 * modality_index:3 * (modality_index + 1), :]
    gyro = x[:, 3 * modality_index + 15:3 * (modality_index + 1) + 15, :]
    return jnp.concatenate([acc, gyro], axis=1)


def _ref_single_modal(x_mod, w1, b1, w2, b2, w3, b3):
    """Reference with the same precision choice: bf16 operands, f32 accumulate."""
    def conv(inp, w, b):
        y = lax.conv_general_dilated(
            inp.astype(jnp.bfloat16), w.astype(jnp.bfloat16), (1,), 'VALID',
            dimension_numbers=('NCH', 'OIH', 'NCH'),
            preferred_element_type=jnp.float32)
        return jnp.maximum(y + b[None, :, :], 0.0)

    y = conv(x_mod, w1, b1)
    y = conv(y, w2, b2)
    y = conv(y, w3, b3)
    return jnp.max(y, axis=2)


# ---------------------------------- main -------------------------------------
if __name__ == "__main__":
    key = jax.random.PRNGKey(0)
    k_x, k_p = jax.random.split(key)

    B, T = 2, 64                          # T >= 46 required by the conv stack
    modality_indices = [True, False, True, True, False]

    # input: (B, 30, T) = 15 acc channels followed by 15 gyro channels
    x = jax.random.normal(k_x, (B, 3 * NUM_MODALITIES * 2, T), jnp.float32)

    enc = DynamicEncoderPallas(modality_indices, k_p)
    outs = enc(x)
    outs = [jax.block_until_ready(o) for o in outs]

    # verify against a plain-JAX reference (same bf16-operand precision)
    assert len(outs) == sum(modality_indices)
    for out, mid in zip(outs, enc.avail_ids):
        assert out.shape == (B, C3)
        ref = _ref_single_modal(get_modality_input_realworld(x, mid),
                                *enc.params[mid])
        assert bool(jnp.allclose(out, ref, atol=1e-2, rtol=1e-2)), (
            "max abs diff", float(jnp.max(jnp.abs(out - ref))))

    print("KERNEL_OK")
</pallas_src>

<mosaic_0001>
module attributes {stable_mosaic.version = 11 : i64} {
  func.func @_encoder_kernel(%arg0: i32, %arg1: i32, %arg2: memref<1x1x16x128xbf16, #tpu.memory_space<vmem>>, %arg3: memref<1x32x384xbf16, #tpu.memory_space<vmem>>, %arg4: memref<1x32x1xf32, #tpu.memory_space<vmem>>, %arg5: memref<1x64x512xbf16, #tpu.memory_space<vmem>>, %arg6: memref<1x64x1xf32, #tpu.memory_space<vmem>>, %arg7: memref<1x96x512xbf16, #tpu.memory_space<vmem>>, %arg8: memref<1x96x1xf32, #tpu.memory_space<vmem>>, %arg9: memref<83x2xf32, #tpu.memory_space<vmem>>, %arg10: memref<1x1x96x2xf32, #tpu.memory_space<vmem>>) attributes {dimension_semantics = [#tpu.dimension_semantics<parallel>, #tpu.dimension_semantics<parallel>], iteration_bounds = array<i64: 3, 1>, scalar_prefetch = 0 : i64, scratch_operands = 0 : i64, tpu.core_type = #tpu.core_type<tc>, window_params = [{transform_indices = @transform_0, window_bounds = array<i64: 1, 1, 16, 128>}, {transform_indices = @transform_1, window_bounds = array<i64: 1, 32, 384>}, {transform_indices = @transform_2, window_bounds = array<i64: 1, 32, 1>}, {transform_indices = @transform_3, window_bounds = array<i64: 1, 64, 512>}, {transform_indices = @transform_4, window_bounds = array<i64: 1, 64, 1>}, {transform_indices = @transform_5, window_bounds = array<i64: 1, 96, 512>}, {transform_indices = @transform_6, window_bounds = array<i64: 1, 96, 1>}, {pipeline_mode = #tpu.pipeline_mode<synchronous>, transform_indices = @transform_7, window_bounds = array<i64: 83, 2>}, {transform_indices = @transform_8, window_bounds = array<i64: 1, 1, 96, 2>}]} {
    %c0 = arith.constant 0 : index
    %c0_0 = arith.constant 0 : index
    %c0_1 = arith.constant 0 : index
    %c0_2 = arith.constant 0 : index
    %0 = vector.load %arg2[%c0, %c0_0, %c0_1, %c0_2] : memref<1x1x16x128xbf16, #tpu.memory_space<vmem>>, vector<1x1x16x128xbf16>
    %1 = vector.shape_cast %0 : vector<1x1x16x128xbf16> to vector<16x128xbf16>
    %2 = vector.extract_strided_slice %1 {offsets = [0, 0], sizes = [16, 105], strides = [1, 1]} : vector<16x128xbf16> to vector<16x105xbf16>
    %3 = vector.extract_strided_slice %1 {offsets = [0, 1], sizes = [16, 105], strides = [1, 1]} : vector<16x128xbf16> to vector<16x105xbf16>
    %4 = vector.extract_strided_slice %1 {offsets = [0, 2], sizes = [16, 105], strides = [1, 1]} : vector<16x128xbf16> to vector<16x105xbf16>
    %5 = vector.extract_strided_slice %1 {offsets = [0, 3], sizes = [16, 105], strides = [1, 1]} : vector<16x128xbf16> to vector<16x105xbf16>
    %6 = vector.extract_strided_slice %1 {offsets = [0, 4], sizes = [16, 105], strides = [1, 1]} : vector<16x128xbf16> to vector<16x105xbf16>
    %7 = vector.extract_strided_slice %1 {offsets = [0, 5], sizes = [16, 105], strides = [1, 1]} : vector<16x128xbf16> to vector<16x105xbf16>
    %8 = vector.extract_strided_slice %1 {offsets = [0, 6], sizes = [16, 105], strides = [1, 1]} : vector<16x128xbf16> to vector<16x105xbf16>
    %9 = vector.extract_strided_slice %1 {offsets = [0, 7], sizes = [16, 105], strides = [1, 1]} : vector<16x128xbf16> to vector<16x105xbf16>
    %10 = vector.extract_strided_slice %1 {offsets = [0, 8], sizes = [16, 105], strides = [1, 1]} : vector<16x128xbf16> to vector<16x105xbf16>
    %11 = vector.extract_strided_slice %1 {offsets = [0, 9], sizes = [16, 105], strides = [1, 1]} : vector<16x128xbf16> to vector<16x105xbf16>
    %12 = vector.extract_strided_slice %1 {offsets = [0, 10], sizes = [16, 105], strides = [1, 1]} : vector<16x128xbf16> to vector<16x105xbf16>
    %13 = vector.extract_strided_slice %1 {offsets = [0, 11], sizes = [16, 105], strides = [1, 1]} : vector<16x128xbf16> to vector<16x105xbf16>
    %14 = vector.extract_strided_slice %1 {offsets = [0, 12], sizes = [16, 105], strides = [1, 1]} : vector<16x128xbf16> to vector<16x105xbf16>
    %15 = vector.extract_strided_slice %1 {offsets = [0, 13], sizes = [16, 105], strides = [1, 1]} : vector<16x128xbf16> to vector<16x105xbf16>
    %16 = vector.extract_strided_slice %1 {offsets = [0, 14], sizes = [16, 105], strides = [1, 1]} : vector<16x128xbf16> to vector<16x105xbf16>
    %17 = vector.extract_strided_slice %1 {offsets = [0, 15], sizes = [16, 105], strides = [1, 1]} : vector<16x128xbf16> to vector<16x105xbf16>
    %18 = vector.extract_strided_slice %1 {offsets = [0, 16], sizes = [16, 105], strides = [1, 1]} : vector<16x128xbf16> to vector<16x105xbf16>
    %19 = vector.extract_strided_slice %1 {offsets = [0, 17], sizes = [16, 105], strides = [1, 1]} : vector<16x128xbf16> to vector<16x105xbf16>
    %20 = vector.extract_strided_slice %1 {offsets = [0, 18], sizes = [16, 105], strides = [1, 1]} : vector<16x128xbf16> to vector<16x105xbf16>
    %21 = vector.extract_strided_slice %1 {offsets = [0, 19], sizes = [16, 105], strides = [1, 1]} : vector<16x128xbf16> to vector<16x105xbf16>
    %22 = vector.extract_strided_slice %1 {offsets = [0, 20], sizes = [16, 105], strides = [1, 1]} : vector<16x128xbf16> to vector<16x105xbf16>
    %23 = vector.extract_strided_slice %1 {offsets = [0, 21], sizes = [16, 105], strides = [1, 1]} : vector<16x128xbf16> to vector<16x105xbf16>
    %24 = vector.extract_strided_slice %1 {offsets = [0, 22], sizes = [16, 105], strides = [1, 1]} : vector<16x128xbf16> to vector<16x105xbf16>
    %25 = vector.extract_strided_slice %1 {offsets = [0, 23], sizes = [16, 105], strides = [1, 1]} : vector<16x128xbf16> to vector<16x105xbf16>
    %26 = tpu.concatenate %2, %3, %4, %5, %6, %7, %8, %9, %10, %11, %12, %13, %14, %15, %16, %17 in 0 : vector<16x105xbf16>, vector<16x105xbf16>, vector<16x105xbf16>, vector<16x105xbf16>, vector<16x105xbf16>, vector<16x105xbf16>, vector<16x105xbf16>, vector<16x105xbf16>, vector<16x105xbf16>, vector<16x105xbf16>, vector<16x105xbf16>, vector<16x105xbf16>, vector<16x105xbf16>, vector<16x105xbf16>, vector<16x105xbf16>, vector<16x105xbf16> -> vector<256x105xbf16>
    %27 = tpu.concatenate %18, %19, %20, %21, %22, %23, %24, %25 in 0 : vector<16x105xbf16>, vector<16x105xbf16>, vector<16x105xbf16>, vector<16x105xbf16>, vector<16x105xbf16>, vector<16x105xbf16>, vector<16x105xbf16>, vector<16x105xbf16> -> vector<128x105xbf16>
    %28 = tpu.concatenate %26, %27 in 0 : vector<256x105xbf16>, vector<128x105xbf16> -> vector<384x105xbf16>
    %c0_3 = arith.constant 0 : index
    %c0_4 = arith.constant 0 : index
    %c0_5 = arith.constant 0 : index
    %29 = vector.load %arg3[%c0_3, %c0_4, %c0_5] : memref<1x32x384xbf16, #tpu.memory_space<vmem>>, vector<1x32x384xbf16>
    %30 = vector.shape_cast %29 : vector<1x32x384xbf16> to vector<32x384xbf16>
    %cst = arith.constant dense<0.000000e+00> : vector<32x105xf32>
    %31 = tpu.matmul %30, %28, %cst {dimension_numbers = #tpu.dot_dimension_numbers<[1], [0], [0], [1], [0, 0, 1, 1], [], []>} : vector<32x384xbf16>, vector<384x105xbf16>, vector<32x105xf32> -> vector<32x105xf32>
    %c0_6 = arith.constant 0 : index
    %c0_7 = arith.constant 0 : index
    %c0_8 = arith.constant 0 : index
    %32 = vector.load %arg4[%c0_6, %c0_7, %c0_8] : memref<1x32x1xf32, #tpu.memory_space<vmem>>, vector<1x32x1xf32>
    %33 = vector.shape_cast %32 : vector<1x32x1xf32> to vector<32x1xf32>
    %34 = vector.broadcast %33 : vector<32x1xf32> to vector<32x105xf32>
    %35 = arith.addf %31, %34 : vector<32x105xf32>
    %cst_9 = arith.constant 0.000000e+00 : f32
    %36 = vector.broadcast %cst_9 : f32 to vector<32x105xf32>
    %37 = arith.maximumf %35, %36 : vector<32x105xf32>
    %38 = arith.truncf %37 : vector<32x105xf32> to vector<32x105xbf16>
    %39 = vector.extract_strided_slice %38 {offsets = [0, 0], sizes = [32, 90], strides = [1, 1]} : vector<32x105xbf16> to vector<32x90xbf16>
    %40 = vector.extract_strided_slice %38 {offsets = [0, 1], sizes = [32, 90], strides = [1, 1]} : vector<32x105xbf16> to vector<32x90xbf16>
    %41 = vector.extract_strided_slice %38 {offsets = [0, 2], sizes = [32, 90], strides = [1, 1]} : vector<32x105xbf16> to vector<32x90xbf16>
    %42 = vector.extract_strided_slice %38 {offsets = [0, 3], sizes = [32, 90], strides = [1, 1]} : vector<32x105xbf16> to vector<32x90xbf16>
    %43 = vector.extract_strided_slice %38 {offsets = [0, 4], sizes = [32, 90], strides = [1, 1]} : vector<32x105xbf16> to vector<32x90xbf16>
    %44 = vector.extract_strided_slice %38 {offsets = [0, 5], sizes = [32, 90], strides = [1, 1]} : vector<32x105xbf16> to vector<32x90xbf16>
    %45 = vector.extract_strided_slice %38 {offsets = [0, 6], sizes = [32, 90], strides = [1, 1]} : vector<32x105xbf16> to vector<32x90xbf16>
    %46 = vector.extract_strided_slice %38 {offsets = [0, 7], sizes = [32, 90], strides = [1, 1]} : vector<32x105xbf16> to vector<32x90xbf16>
    %47 = vector.extract_strided_slice %38 {offsets = [0, 8], sizes = [32, 90], strides = [1, 1]} : vector<32x105xbf16> to vector<32x90xbf16>
    %48 = vector.extract_strided_slice %38 {offsets = [0, 9], sizes = [32, 90], strides = [1, 1]} : vector<32x105xbf16> to vector<32x90xbf16>
    %49 = vector.extract_strided_slice %38 {offsets = [0, 10], sizes = [32, 90], strides = [1, 1]} : vector<32x105xbf16> to vector<32x90xbf16>
    %50 = vector.extract_strided_slice %38 {offsets = [0, 11], sizes = [32, 90], strides = [1, 1]} : vector<32x105xbf16> to vector<32x90xbf16>
    %51 = vector.extract_strided_slice %38 {offsets = [0, 12], sizes = [32, 90], strides = [1, 1]} : vector<32x105xbf16> to vector<32x90xbf16>
    %52 = vector.extract_strided_slice %38 {offsets = [0, 13], sizes = [32, 90], strides = [1, 1]} : vector<32x105xbf16> to vector<32x90xbf16>
    %53 = vector.extract_strided_slice %38 {offsets = [0, 14], sizes = [32, 90], strides = [1, 1]} : vector<32x105xbf16> to vector<32x90xbf16>
    %54 = vector.extract_strided_slice %38 {offsets = [0, 15], sizes = [32, 90], strides = [1, 1]} : vector<32x105xbf16> to vector<32x90xbf16>
    %55 = tpu.concatenate %39, %40, %41, %42, %43, %44, %45, %46, %47, %48, %49, %50, %51, %52, %53, %54 in 0 : vector<32x90xbf16>, vector<32x90xbf16>, vector<32x90xbf16>, vector<32x90xbf16>, vector<32x90xbf16>, vector<32x90xbf16>, vector<32x90xbf16>, vector<32x90xbf16>, vector<32x90xbf16>, vector<32x90xbf16>, vector<32x90xbf16>, vector<32x90xbf16>, vector<32x90xbf16>, vector<32x90xbf16>, vector<32x90xbf16>, vector<32x90xbf16> -> vector<512x90xbf16>
    %c0_10 = arith.constant 0 : index
    %c0_11 = arith.constant 0 : index
    %c0_12 = arith.constant 0 : index
    %56 = vector.load %arg5[%c0_10, %c0_11, %c0_12] : memref<1x64x512xbf16, #tpu.memory_space<vmem>>, vector<1x64x512xbf16>
    %57 = vector.shape_cast %56 : vector<1x64x512xbf16> to vector<64x512xbf16>
    %cst_13 = arith.constant dense<0.000000e+00> : vector<64x90xf32>
    %58 = tpu.matmul %57, %55, %cst_13 {dimension_numbers = #tpu.dot_dimension_numbers<[1], [0], [0], [1], [0, 0, 1, 1], [], []>} : vector<64x512xbf16>, vector<512x90xbf16>, vector<64x90xf32> -> vector<64x90xf32>
    %c0_14 = arith.constant 0 : index
    %c0_15 = arith.constant 0 : index
    %c0_16 = arith.constant 0 : index
    %59 = vector.load %arg6[%c0_14, %c0_15, %c0_16] : memref<1x64x1xf32, #tpu.memory_space<vmem>>, vector<1x64x1xf32>
    %60 = vector.shape_cast %59 : vector<1x64x1xf32> to vector<64x1xf32>
    %61 = vector.broadcast %60 : vector<64x1xf32> to vector<64x90xf32>
    %62 = arith.addf %58, %61 : vector<64x90xf32>
    %cst_17 = arith.constant 0.000000e+00 : f32
    %63 = vector.broadcast %cst_17 : f32 to vector<64x90xf32>
    %64 = arith.maximumf %62, %63 : vector<64x90xf32>
    %65 = arith.truncf %64 : vector<64x90xf32> to vector<64x90xbf16>
    %66 = vector.extract_strided_slice %65 {offsets = [0, 0], sizes = [64, 83], strides = [1, 1]} : vector<64x90xbf16> to vector<64x83xbf16>
    %67 = vector.extract_strided_slice %65 {offsets = [0, 1], sizes = [64, 83], strides = [1, 1]} : vector<64x90xbf16> to vector<64x83xbf16>
    %68 = vector.extract_strided_slice %65 {offsets = [0, 2], sizes = [64, 83], strides = [1, 1]} : vector<64x90xbf16> to vector<64x83xbf16>
    %69 = vector.extract_strided_slice %65 {offsets = [0, 3], sizes = [64, 83], strides = [1, 1]} : vector<64x90xbf16> to vector<64x83xbf16>
    %70 = vector.extract_strided_slice %65 {offsets = [0, 4], sizes = [64, 83], strides = [1, 1]} : vector<64x90xbf16> to vector<64x83xbf16>
    %71 = vector.extract_strided_slice %65 {offsets = [0, 5], sizes = [64, 83], strides = [1, 1]} : vector<64x90xbf16> to vector<64x83xbf16>
    %72 = vector.extract_strided_slice %65 {offsets = [0, 6], sizes = [64, 83], strides = [1, 1]} : vector<64x90xbf16> to vector<64x83xbf16>
    %73 = vector.extract_strided_slice %65 {offsets = [0, 7], sizes = [64, 83], strides = [1, 1]} : vector<64x90xbf16> to vector<64x83xbf16>
    %74 = tpu.concatenate %66, %67, %68, %69, %70, %71, %72, %73 in 0 : vector<64x83xbf16>, vector<64x83xbf16>, vector<64x83xbf16>, vector<64x83xbf16>, vector<64x83xbf16>, vector<64x83xbf16>, vector<64x83xbf16>, vector<64x83xbf16> -> vector<512x83xbf16>
    %c0_18 = arith.constant 0 : index
    %c0_19 = arith.constant 0 : index
    %c0_20 = arith.constant 0 : index
    %75 = vector.load %arg7[%c0_18, %c0_19, %c0_20] : memref<1x96x512xbf16, #tpu.memory_space<vmem>>, vector<1x96x512xbf16>
    %76 = vector.shape_cast %75 : vector<1x96x512xbf16> to vector<96x512xbf16>
    %cst_21 = arith.constant dense<0.000000e+00> : vector<96x83xf32>
    %77 = tpu.matmul %76, %74, %cst_21 {dimension_numbers = #tpu.dot_dimension_numbers<[1], [0], [0], [1], [0, 0, 1, 1], [], []>} : vector<96x512xbf16>, vector<512x83xbf16>, vector<96x83xf32> -> vector<96x83xf32>
    %c0_22 = arith.constant 0 : index
    %c0_23 = arith.constant 0 : index
    %c0_24 = arith.constant 0 : index
    %78 = vector.load %arg8[%c0_22, %c0_23, %c0_24] : memref<1x96x1xf32, #tpu.memory_space<vmem>>, vector<1x96x1xf32>
    %79 = vector.shape_cast %78 : vector<1x96x1xf32> to vector<96x1xf32>
    %80 = vector.broadcast %79 : vector<96x1xf32> to vector<96x83xf32>
    %81 = arith.addf %77, %80 : vector<96x83xf32>
    %cst_25 = arith.constant 0.000000e+00 : f32
    %82 = vector.broadcast %cst_25 : f32 to vector<96x83xf32>
    %83 = arith.maximumf %81, %82 : vector<96x83xf32>
    %84 = vector.extract_strided_slice %83 {offsets = [0, 1], sizes = [96, 82], strides = [1, 1]} : vector<96x83xf32> to vector<96x82xf32>
    %cst_26 = arith.constant 0.000000e+00 : f32
    %85 = vector.broadcast %cst_26 : f32 to vector<96x1xf32>
    %86 = tpu.concatenate %84, %85 in 1 : vector<96x82xf32>, vector<96x1xf32> -> vector<96x83xf32>
    %87 = arith.maximumf %83, %86 : vector<96x83xf32>
    %88 = vector.extract_strided_slice %87 {offsets = [0, 2], sizes = [96, 81], strides = [1, 1]} : vector<96x83xf32> to vector<96x81xf32>
    %cst_27 = arith.constant 0.000000e+00 : f32
    %89 = vector.broadcast %cst_27 : f32 to vector<96x2xf32>
    %90 = tpu.concatenate %88, %89 in 1 : vector<96x81xf32>, vector<96x2xf32> -> vector<96x83xf32>
    %91 = arith.maximumf %87, %90 : vector<96x83xf32>
    %92 = vector.extract_strided_slice %91 {offsets = [0, 4], sizes = [96, 79], strides = [1, 1]} : vector<96x83xf32> to vector<96x79xf32>
    %cst_28 = arith.constant 0.000000e+00 : f32
    %93 = vector.broadcast %cst_28 : f32 to vector<96x4xf32>
    %94 = tpu.concatenate %92, %93 in 1 : vector<96x79xf32>, vector<96x4xf32> -> vector<96x83xf32>
    %95 = arith.maximumf %91, %94 : vector<96x83xf32>
    %96 = vector.extract_strided_slice %95 {offsets = [0, 8], sizes = [96, 75], strides = [1, 1]} : vector<96x83xf32> to vector<96x75xf32>
    %cst_29 = arith.constant 0.000000e+00 : f32
    %97 = vector.broadcast %cst_29 : f32 to vector<96x8xf32>
    %98 = tpu.concatenate %96, %97 in 1 : vector<96x75xf32>, vector<96x8xf32> -> vector<96x83xf32>
    %99 = arith.maximumf %95, %98 : vector<96x83xf32>
    %100 = vector.extract_strided_slice %99 {offsets = [0, 3], sizes = [96, 80], strides = [1, 1]} : vector<96x83xf32> to vector<96x80xf32>
    %cst_30 = arith.constant 0.000000e+00 : f32
    %101 = vector.broadcast %cst_30 : f32 to vector<96x3xf32>
    %102 = tpu.concatenate %100, %101 in 1 : vector<96x80xf32>, vector<96x3xf32> -> vector<96x83xf32>
    %103 = arith.maximumf %99, %102 : vector<96x83xf32>
    %c0_31 = arith.constant 0 : index
    %c0_32 = arith.constant 0 : index
    %104 = vector.load %arg9[%c0_31, %c0_32] : memref<83x2xf32, #tpu.memory_space<vmem>>, vector<83x2xf32>
    %cst_33 = arith.constant dense<0.000000e+00> : vector<96x2xf32>
    %105 = tpu.matmul %103, %104, %cst_33 {dimension_numbers = #tpu.dot_dimension_numbers<[1], [0], [0], [1], [0, 0, 1, 1], [], []>} : vector<96x83xf32>, vector<83x2xf32>, vector<96x2xf32> -> vector<96x2xf32>
    %c0_34 = arith.constant 0 : index
    %c0_35 = arith.constant 0 : index
    %c0_36 = arith.constant 0 : index
    %c0_37 = arith.constant 0 : index
    %106 = vector.load %arg10[%c0_34, %c0_35, %c0_36, %c0_37] : memref<1x1x96x2xf32, #tpu.memory_space<vmem>>, vector<1x1x96x2xf32>
    %107 = vector.shape_cast %106 : vector<1x1x96x2xf32> to vector<96x2xf32>
    %108 = vector.shape_cast %105 : vector<96x2xf32> to vector<1x1x96x2xf32>
    tpu.vector_store %arg10[%c0_34, %c0_35, %c0_36, %c0_37], %108 {strides = array<i32>} : memref<1x1x96x2xf32, #tpu.memory_space<vmem>>, vector<1x1x96x2xf32>,
    return
  }
  func.func @transform_0(%arg0: i32, %arg1: i32) -> (i32, i32, i32, i32) {
    %c0_i32 = arith.constant 0 : i32
    %c0_i32_0 = arith.constant 0 : i32
    %c0_i32_1 = arith.constant 0 : i32
    return %arg0, %arg1, %c0_i32, %c0_i32_0 : i32, i32, i32, i32
  }
  func.func @transform_1(%arg0: i32, %arg1: i32) -> (i32, i32, i32) {
    %c0_i32 = arith.constant 0 : i32
    %c0_i32_0 = arith.constant 0 : i32
    %c0_i32_1 = arith.constant 0 : i32
    return %arg0, %c0_i32, %c0_i32_0 : i32, i32, i32
  }
  func.func @transform_2(%arg0: i32, %arg1: i32) -> (i32, i32, i32) {
    %c0_i32 = arith.constant 0 : i32
    %c0_i32_0 = arith.constant 0 : i32
    %c0_i32_1 = arith.constant 0 : i32
    return %arg0, %c0_i32, %c0_i32_0 : i32, i32, i32
  }
  func.func @transform_3(%arg0: i32, %arg1: i32) -> (i32, i32, i32) {
    %c0_i32 = arith.constant 0 : i32
    %c0_i32_0 = arith.constant 0 : i32
    %c0_i32_1 = arith.constant 0 : i32
    return %arg0, %c0_i32, %c0_i32_0 : i32, i32, i32
  }
  func.func @transform_4(%arg0: i32, %arg1: i32) -> (i32, i32, i32) {
    %c0_i32 = arith.constant 0 : i32
    %c0_i32_0 = arith.constant 0 : i32
    %c0_i32_1 = arith.constant 0 : i32
    return %arg0, %c0_i32, %c0_i32_0 : i32, i32, i32
  }
  func.func @transform_5(%arg0: i32, %arg1: i32) -> (i32, i32, i32) {
    %c0_i32 = arith.constant 0 : i32
    %c0_i32_0 = arith.constant 0 : i32
    %c0_i32_1 = arith.constant 0 : i32
    return %arg0, %c0_i32, %c0_i32_0 : i32, i32, i32
  }
  func.func @transform_6(%arg0: i32, %arg1: i32) -> (i32, i32, i32) {
    %c0_i32 = arith.constant 0 : i32
    %c0_i32_0 = arith.constant 0 : i32
    %c0_i32_1 = arith.constant 0 : i32
    return %arg0, %c0_i32, %c0_i32_0 : i32, i32, i32
  }
  func.func @transform_7(%arg0: i32, %arg1: i32) -> (i32, i32) {
    %c0_i32 = arith.constant 0 : i32
    %c0_i32_0 = arith.constant 0 : i32
    %c0_i32_1 = arith.constant 0 : i32
    return %c0_i32, %c0_i32_0 : i32, i32
  }
  func.func @transform_8(%arg0: i32, %arg1: i32) -> (i32, i32, i32, i32) {
    %c0_i32 = arith.constant 0 : i32
    %c0_i32_0 = arith.constant 0 : i32
    %c0_i32_1 = arith.constant 0 : i32
    return %arg0, %arg1, %c0_i32, %c0_i32_0 : i32, i32, i32, i32
  }
}

</mosaic_0001>

<bundles_post_ra>
// kernel: encoder_forward.1
= control target key start
LH: loop header
LB: loop body
LE: loop exit
PB: predicated region body
PF: predicated region fallthrough
CT: control target
= control target key end

     0   :  { %13 = vsyncpa [#allocation3], 0  ;;  %s3654_s0 = inlined_call_operand.vmem [shape: bf16[3,1,16,128], index: 0, kind: input, shape index: {}]   ;;  %s3655_s1 = inlined_call_operand.hbm [shape: bf16[3,32,384], index: 1, kind: input, shape index: {}]   ;;  %s3656_s2 = inlined_call_operand.vmem [shape: f32[3,32,1], index: 2, kind: input, shape index: {}]   ;;  %s3657_s3 = inlined_call_operand.vmem [shape: bf16[3,64,512], index: 3, kind: input, shape index: {}]   ;;  %s3658_s4 = inlined_call_operand.vmem [shape: f32[3,64,1], index: 4, kind: input, shape index: {}]   ;;  %s3659_s5 = inlined_call_operand.vmem [shape: bf16[3,96,512], index: 5, kind: input, shape index: {}]   ;;  %s3660_s6 = inlined_call_operand.vmem [shape: f32[3,96,1], index: 6, kind: input, shape index: {}]   ;;  %s3661_s7 = inlined_call_operand.vmem [shape: f32[83,2], index: 7, kind: input, shape index: {}]   ;;  %s3662_s8 = inlined_call_operand.vmem [shape: f32[3,1,96,2], index: 8, kind: output, shape index: {}]  }
   0x1   :  { %15 = vsyncpa [#allocation3 + $0x1], 0  ;;  %s3020_s27 = smov 0   ;;  %s3022_s28 = smov 0  }
   0x2   :  { %s3024_s29 = smov 0   ;;  %s3026_s30 = smov 0  }
   0x3   :  { %s3028_s9 = smov 0   ;;  %s3030_s10 = smov 0  }
   0x4 LB: > { %s2315_s11 = sadd.s32 4294967295, %s2953_s10   ;;  %s33_s12 = sadd.s32 1, %s2949_s9  ;;  %s2953_s10 = sphi %s3030_s10, %s21_s10   ;;  %s2949_s9 = sphi %s3028_s9, %s3695_s9   ;;  %s2945_s30 = sphi %s3026_s30, %s3694_s30   ;;  %s2941_s29 = sphi %s3024_s29, %s3693_s29   ;;  %s2937_s28 = sphi %s3022_s28, %s3692_s28   ;;  %s2933_s27 = sphi %s3020_s27, %s3691_s27  }
   0x5   : > { %p35_p0 = scmp.ge.s32.totalorder %s33_s12, 3  ;;  %s68_s13 = sadd.s32 1, %s2941_s29 }
   0x6   : > { %p75_p1 = scmp.ne.s32.totalorder %s2941_s29, %s2937_s28  ;;  %p76_p2 = scmp.eq.s32.totalorder %s2953_s10, 0 }
   0x7   : > { %s3697_s12 = smov (%p35_p0, %s33_s12), 0  ;;  %p81_p4 = scmp.ne.s32.totalorder %s2937_s28, %s2933_s27 }
   0x8   : > { %p77_p3 = por %p76_p2, %p75_p1  ;;  %s65_s14 = ssub.s32 %s2949_s9, %s3697_s12 }
   0x9   : > { %p82_p5 = scmp.eq.s32.totalorder %s2315_s11, 0  ;;  %p66_p6 = scmp.eq.s32.totalorder %s65_s14, 0 }
   0xa   : > { %p2736_p8 = scmp.lt.s32.totalorder %s2953_s10, 3  ;;  %s299_s17 = sand.u32 1, %s2941_s29  }
   0xb   : > { %p3059_p7 = por %p82_p5, %p81_p4  ;;  %s2726_s18 = smul.u32 768, %s2949_s9 }
   0xc   : > { %s3065_s16 = scalar_select %p66_p6, %s2941_s29, %s68_s13  }
   0xd   : > { %s2725_s19 = smul.u32 48, %s299_s17  ;;  %s309_s22 = scalar_lea.hbm %s3655_s1, %s2726_s18 }
   0xe   : > { %p3072_p9 = pnand %p2736_p8, %p77_p3  ;;  %s300_s26 = scalar_lea.sflag [#allocation3], %s299_s17 }
   0xf   : > { %s303_s24 = scalar_lea.vmem [#allocation2], %s2725_s19  ;;  %s2955_s11 = smov [#allocation2]  }
  0x10   : > { %s310_s25 = sshll.u32 %s303_s24, 4  ;;  %p2877_p10 = pneg %p3072_p9  ;;  %s311_s25 = int_to_ptr.vmem [resolvable:$true] %s310_s25 }
  0x11   : > { %s2888_s27 = scalar_lea.vmem %s311_s25, 768  ;;  %s2893_s13 = sshll.u32 %s2955_s11, 4  ;;  %s2894_s13 = int_to_ptr.vmem [resolvable:$false] %s2893_s13 }
  0x12   : > { %p2889_p11 = scmp.ne.s32.totalorder %s311_s25, %s2888_s27  ;;  %s2895_s14 = scalar_lea.vmem %s2894_s13, 1536 }
  0x13   : > { %p2896_p0 = scmp.lt.s32.totalorder %s311_s25, %s2894_s13  ;;  %p2897_p1 = scmp.lt.s32.totalorder %s2895_s14, %s2888_s27 }
  0x14   : > { %p2891_p12 = pnand %p2889_p11, %p2877_p10 }
  0x15   : > { %p2898_p2 = por %p2897_p1, %p2896_p0 }
  0x16   : > { %p2892_p13 = pneg %p2891_p12 }
  0x18   : > { %p2899_p3 = pnand %p2898_p2, %p2892_p13 }
  0x1a   : > { %2902 = shalt.err (!%p2899_p3)
}
  0x1b   : > { %s2956_s18 = smov 192   ;;  %s2957_s17 = smov 12  }
  0x1c   : > { %2735 = dma.hbm_to_vmem [thread:$0]  (!%p3072_p9), %s309_s22, 768, %s311_s25, %s300_s26, %s2956_s18, %s2956_s18, %s2957_s17  }
  0x1d   : > { %p2320_p4 = scmp.ge.s32.totalorder %s2953_s10, 1  ;;  %p358_p5 = scmp.lt.s32.totalorder %s2953_s10, 4 }
  0x1f   : > { %p359_p6 = pnand %p2320_p4, %p358_p5 }
  0x20   : > { %s364_s19 = sand.u32 (!%p359_p6), 1, %s2937_s28  }
  0x21   : > { %362 = sbr.rel (%p359_p6) target bundleno = 2098 (0x832), region = 52  ;;  %s365_s21 = scalar_lea.sflag (!%p359_p6), [#allocation3], %s364_s19 }
  0x22   : > { %s2727_s20 = smul.u32 (!%p359_p6), 48, %s364_s19 }
  0x24   : > { %s3083_s24 = scalar_lea.vmem (!%p359_p6), [#allocation2], %s2727_s20 }
  0x26   : > { %2928 = dma.done.wait (%p3059_p7), %s365_s21, 768  }
  0x27   : > { %2930 = vsyncadd (%p3059_p7), %s365_s21, 4294966528  ;;  %p439_p8 = scmp.lt.s32.totalorder %s2945_s30, 2  ;;  %s3673_s27 = smov 123   ;;  %v2809_v1 = vld [vmem:[%s3083_s24 + $0x4] ss:$12 sps:$4 sm:$0xff]   ;;  %v2974_v14 = vmov 0  }
  0x28   : > { %s2959_s11 = smov 121   ;;  %s3663_s15 = smov 124   ;;  %656 = vmatprep.mubr.bf16.mxu0 %v2809_v1  ;;  %v2813_v12 = vld [vmem:[%s3083_s24 + $0x8] ss:$12 sps:$4 sm:$0xff]   ;;  %2805 = vset.pattern.permute.xlu0 %v2974_v14  ;;  %v2807_v23 = vld [vmem:[%s3083_s24] ss:$12 sps:$4 sm:$0xff]  }
  0x29   : > { %s3699_s30 = smov (!%p439_p8, %s2945_s30), 2  ;;  %s2961_s13 = smov 122   ;;  %2659 = vmatprep.mubr.bf16.mxu1 %v2813_v12  ;;  %2804 = vset.pattern.permute.xlu1 %v2974_v14  ;;  %v2810_v24 = vld [vmem:[%s3083_s24 + $0x1c] ss:$12 sps:$4 sm:$0xff]   ;;  %v2812_v25 = vld [vmem:[%s3083_s24 + $0x18] ss:$12 sps:$4 sm:$0xff]  }
  0x2a   : > { %s2394_s22 = sshll.u32 %s3699_s30, 3  ;;  %s2962_s14 = smov 126   ;;  %v2814_v34 = vld [vmem:[%s3083_s24 + $0x20] ss:$12 sps:$4 sm:$0xff]   ;;  %vm1632_vm0 = vcmask 670720   ;;  %vm1705_vm1 = vcmask 662528  }
  0x2b   : > { %s447_s26 = scalar_lea.vmem %s3654_s0, %s2394_s22  ;;  %s3678_s18 = smov 125   ;;  %vm1778_vm2 = vcmask 646144   ;;  %vm1997_vm3 = vcmask 1042432   ;;  %vm1851_vm4 = vcmask 613376   ;;  %vm1924_vm5 = vcmask 654336  }
  0x2c   : > { %v3097_v0 = vld [vmem:[%s447_s26] sm:$0xff]   ;;  %s2964_s17 = smov 113   ;;  %s3675_s19 = smov 127   ;;  %vm1960_vm6 = vcmask 678912   ;;  %vm2126_vm7 = vcmask 15360  }
  0x2d   : > { %503 = vrot.lane.b32.xlu1 %v3097_v0, %s3673_s27  ;;  %509 = vrot.lane.b32.xlu0 %v3097_v0, %s2959_s11  ;;  %s3677_s20 = smov 114   ;;  %s3669_s21 = smov 115  }
  0x2e   : > { %s3665_s22 = smov 116   ;;  %s2969_s23 = smov 117  }
  0x2f   : > { %s2970_s25 = smov 118   ;;  %s3671_s26 = smov 119  }
  0x30   : > { %s3682_s24 = smov 123  }
  0x31   : > { %500 = vrot.lane.b32.xlu1 %v3097_v0, %s3663_s15  ;;  %506 = vrot.lane.b32.xlu0 %v3097_v0, %s2961_s13  ;;  %s3667_s15 = smov 120  }
  0x35   : > { %494 = vrot.lane.b32.xlu1 %v3097_v0, %s2962_s14  ;;  %497 = vrot.lane.b32.xlu0 %v3097_v0, %s3678_s18 }
  0x39   : > { %533 = vrot.lane.b32.xlu1 %v3097_v0, %s2964_s17  ;;  %491 = vrot.lane.b32.xlu0 %v3097_v0, %s3675_s19 }
  0x3d   : > { %530 = vrot.lane.b32.xlu0 %v3097_v0, %s3677_s20  ;;  %527 = vrot.lane.b32.xlu1 %v3097_v0, %s3669_s21  ;;  %s3685_s21 = smov 116  }
  0x41   : > { %524 = vrot.lane.b32.xlu0 %v3097_v0, %s3665_s22  ;;  %s2973_s22 = smov 112  }
  0x45   : > { %521 = vrot.lane.b32.xlu0 %v3097_v0, %s2969_s23 }
  0x49   : > { %518 = vrot.lane.b32.xlu0 %v3097_v0, %s2970_s25 }
  0x4d   : > { %515 = vrot.lane.b32.xlu0 %v3097_v0, %s3671_s26  ;;  %s2396_s26 = sshll.u32 %s3699_s30, 7 }
  0x51   : > { %512 = vrot.lane.b32.xlu0 %v3097_v0, %s3667_s15  ;;  %s2395_s15 = sshll.u32 %s3699_s30, 5 }
  0x52   : > { %s452_s27 = scalar_lea.vmem %s3656_s2, %s2395_s15  ;;  %s3684_s15 = smov 115  }
  0x53   : > { %v570_v15 = vld [vmem:[%s452_s27 + $0x10] sm:$0xff]  ;;  %v571_v16 = vld [vmem:[%s452_s27 + $0x18] sm:$0xff]  ;;  %v568_v18 = vld [vmem:[%s452_s27] sm:$0xff] }
  0x54   : > { %v569_v20 = vld [vmem:[%s452_s27 + $0x8] sm:$0xff]  ;;  %s3683_s27 = smov 119  }
  0x9f   : > { %v504_v2 = vpop.permute.xlu1 %503  ;;  %v510_v3 = vpop.permute.xlu0 %509 }
  0xa0   : > { %550 = vrot.lane.b32.xlu1 %v510_v3, %s2973_s22 }
  0xa3   : > { %v501_v4 = vpop.permute.xlu1 %500  ;;  %v507_v5 = vpop.permute.xlu0 %506 }
  0xa4   : > { %548 = vrot.lane.b32.xlu1 %v507_v5, %s2973_s22 }
  0xa7   : > { %v495_v6 = vpop.permute.xlu1 %494  ;;  %v498_v7 = vpop.permute.xlu0 %497 }
  0xa8   : > { %546 = vrot.lane.b32.xlu1 %v504_v2, %s2973_s22  ;;  %540 = vrot.lane.b32.xlu0 %v495_v6, %s2973_s22 }
  0xab   : > { %v534_v8 = vpop.permute.xlu1 %533  ;;  %v492_v9 = vpop.permute.xlu0 %491 }
  0xac   : > { %2398 = vmatprep.subr.bf16.mxu0 %v534_v8  ;;  %544 = vrot.lane.b32.xlu1 %v501_v4, %s2973_s22 }
  0xad   : > { %2399 = vmatpush3.bf16.msra.mxu0 %v510_v3  ;;  %536 = vrot.lane.b32.xlu0 %v3097_v0, %s2973_s22 }
  0xaf   : > { %v531_v10 = vpop.permute.xlu0 %530  ;;  %v528_v11 = vpop.permute.xlu1 %527 }
  0xb0   : > { %542 = vrot.lane.b32.xlu1 %v498_v7, %s2973_s22  ;;  %2400 = vmatprep.subr.bf16.mxu0 %v531_v10 }
  0xb1   : > { %2401 = vmatpush3.bf16.msra.mxu0 %v507_v5  ;;  %589 = vperm.xlu0 %2805, %v571_v16  }
  0xb2   : > { %2402 = vmatprep.subr.bf16.mxu0 %v528_v11 }
  0xb3   : > { %v525_v13 = vpop.permute.xlu0 %524 }
  0xb4   : > { %538 = vrot.lane.b32.xlu1 %v492_v9, %s2973_s22  ;;  %s3686_s22 = smov 124  }
  0xb5   : > { %2403 = vmatpush3.bf16.msra.mxu0 %v504_v2 }
  0xb6   : > { %2404 = vmatprep.subr.bf16.mxu0 %v525_v13 }
  0xb7   : > { %v522_v17 = vpop.permute.xlu0 %521 }
  0xb8   : > { %584 = vperm.xlu1 %2804, %v570_v15  }
  0xb9   : > { %2405 = vmatpush3.bf16.msra.mxu0 %v501_v4 }
  0xba   : > { %2406 = vmatprep.subr.bf16.mxu0 %v522_v17 }
  0xbb   : > { %v519_v19 = vpop.permute.xlu0 %518 }
  0xbc   : > { %574 = vperm.xlu1 %2804, %v568_v18  }
  0xbd   : > { %2407 = vmatpush3.bf16.msra.mxu0 %v498_v7 }
  0xbe   : > { %2408 = vmatprep.subr.bf16.mxu0 %v519_v19 }
  0xbf   : > { %v516_v21 = vpop.permute.xlu0 %515 }
  0xc0   : > { %579 = vperm.xlu1 %2804, %v569_v20  }
  0xc1   : > { %2409 = vmatpush3.bf16.msra.mxu0 %v495_v6 }
  0xc2   : > { %2410 = vmatprep.subr.bf16.mxu0 %v516_v21 }
  0xc3   : > { %v513_v22 = vpop.permute.xlu0 %512 }
  0xc5   : > { %2411 = vmatpush3.bf16.msra.mxu0 %v492_v9 }
  0xc6   : > { %2412 = vmatprep.subr.bf16.mxu0 %v513_v22 }
  0xc9   : > { %2413 = vmatpush3.bf16.msra.mxu0 %v3097_v0 }
  0xcc   : > { %657 = vmatmul.mubr.bf16.vlgmr.msra.gmra.mxu0 %v2807_v23 }
  0xcd   : > { %664 = vmatprep.mubr.bf16.mxu0 %v2810_v24 }
  0xd4   : > { %665 = vmatmul.mubr.bf16.gmra.mxu0 %v2812_v25 }
 0x112   : > { %v551_v26 = vpop.permute.xlu1 %550 }
 0x113   : > { %2643 = vmatprep.subr.bf16.mxu1 %v551_v26 }
 0x114   : > { %2644 = vmatpush3.bf16.msra.mxu1 %v551_v26 }
 0x116   : > { %v549_v27 = vpop.permute.xlu1 %548 }
 0x117   : > { %2645 = vmatprep.subr.bf16.mxu1 %v549_v27 }
 0x118   : > { %2646 = vmatpush3.bf16.msra.mxu1 %v549_v27 }
 0x11a   : > { %v547_v28 = vpop.permute.xlu1 %546  ;;  %v541_v31 = vpop.permute.xlu0 %540 }
 0x11b   : > { %2647 = vmatprep.subr.bf16.mxu1 %v547_v28 }
 0x11c   : > { %2648 = vmatpush3.bf16.msra.mxu1 %v547_v28 }
 0x11e   : > { %v545_v29 = vpop.permute.xlu1 %544 }
 0x11f   : > { %2649 = vmatprep.subr.bf16.mxu1 %v545_v29  ;;  %v537_v33 = vpop.permute.xlu0 %536 }
 0x120   : > { %2650 = vmatpush3.bf16.msra.mxu1 %v545_v29 }
 0x122   : > { %v543_v30 = vpop.permute.xlu1 %542 }
 0x123   : > { %2651 = vmatprep.subr.bf16.mxu1 %v543_v30 }
 0x124   : > { %2652 = vmatpush3.bf16.msra.mxu1 %v543_v30 }
 0x125   : > { %2653 = vmatprep.subr.bf16.mxu1 %v541_v31 }
 0x126   : > { %v539_v32 = vpop.permute.xlu1 %538 }
 0x128   : > { %2654 = vmatpush3.bf16.msra.mxu1 %v541_v31 }
 0x129   : > { %2655 = vmatprep.subr.bf16.mxu1 %v539_v32 }
 0x12c   : > { %2656 = vmatpush3.bf16.msra.mxu1 %v539_v32  ;;  %v590_v45 = vpop.permute.xlu0 %589 }
 0x12d   : > { %2657 = vmatprep.subr.bf16.mxu1 %v537_v33 }
 0x130   : > { %2658 = vmatpush3.bf16.msra.mxu1 %v537_v33 }
 0x133   : > { %2660 = vmatmul.mubr.bf16.vlgmr.msra.gmra.mxu1 %v2814_v34  ;;  %v585_v46 = vpop.permute.xlu1 %584 }
 0x137   : > { %v575_v57 = vpop.permute.xlu1 %574 }
 0x13b   : > { %v580_v59 = vpop.permute.xlu1 %579 }
 0x18c   : > { %v2414_v35 = vpop.f32.mrf.mxu0 }
 0x18e   : > { %v2415_v36 = vpop.f32.mrf.mxu0 }
 0x18f   : > { %v2416_v60 = vadd.f32 %v2415_v36, %v2414_v35 }
 0x190   : > { %v2417_v37 = vpop.f32.mrf.mxu0 }
 0x191   : > { %v659_v63 = vadd.f32 %v2416_v60, %v575_v57 }
 0x192   : > { %v2418_v38 = vpop.f32.mrf.mxu0 }
 0x193   : > { %v2419_v58 = vadd.f32 %v2418_v38, %v2417_v37 }
 0x194   : > { %v2420_v39 = vpop.f32.mrf.mxu0 }
 0x195   : > { %v662_v62 = vadd.f32 %v2419_v58, %v580_v59 }
 0x196   : > { %v2421_v40 = vpop.f32.mrf.mxu0 }
 0x197   : > { %v2422_v43 = vadd.f32 %v2421_v40, %v2420_v39 }
 0x198   : > { %v2423_v41 = vpop.f32.mrf.mxu0 }
 0x199   : > { %v667_v48 = vadd.f32 %v2422_v43, %v585_v46 }
 0x19a   : > { %v2424_v42 = vpop.f32.mrf.mxu0 }
 0x19b   : > { %v2425_v44 = vadd.f32 %v2424_v42, %v2423_v41 }
 0x19d   : > { %v670_v50 = vadd.f32 %v2425_v44, %v590_v45 }
 0x1f3   : > { %v2661_v47 = vpop.f32.mrf.mxu1 }
 0x1f4   : > { %v716_v51 = vadd.f32 %v2661_v47, %v667_v48 }
 0x1f5   : > { %v707_v49 = vpop.f32.mrf.mxu1 }
 0x1f6   : > { %v724_v54 = vmax.f32 %v716_v51, 0.0  ;;  %v708_v1 = vadd.f32 %v707_v49, %v659_v63 }
 0x1f7   : > { %v2662_v52 = vpop.f32.mrf.mxu1 }
 0x1f8   : > { %v719_v53 = vadd.f32 %v2662_v52, %v670_v50  ;;  %v722_v3 = vmax.f32 %v708_v1, 0.0 }
 0x1f9   : > { %v710_v61 = vpop.f32.mrf.mxu1 }
 0x1fa   : > { %v725_v55 = vmax.f32 %v719_v53, 0.0  ;;  %v711_v0 = vadd.f32 %v710_v61, %v662_v62 }
 0x1fc   : > { %v3141_v56 = vpack.c.bf16 %v725_v55, %v724_v54  ;;  %v723_v2 = vmax.f32 %v711_v0, 0.0 }
 0x1fe   : > { %744 = vrot.lane.b32.xlu1 %v3141_v56, %s3678_s18  ;;  %768 = vrot.lane.b32.xlu0 %v3141_v56, %s2959_s11  ;;  %v3171_v4 = vpack.c.bf16 %v723_v2, %v722_v3 }
 0x202   : > { %792 = vrot.lane.b32.xlu1 %v3141_v56, %s2969_s23  ;;  %816 = vrot.lane.b32.xlu0 %v3141_v56, %s2964_s17 }
 0x206   : > { %738 = vrot.lane.b32.xlu1 %v3141_v56, %s2962_s14  ;;  %762 = vrot.lane.b32.xlu0 %v3141_v56, %s2961_s13 }
 0x20a   : > { %786 = vrot.lane.b32.xlu1 %v3141_v56, %s2970_s25  ;;  %810 = vrot.lane.b32.xlu0 %v3141_v56, %s3677_s20  ;;  %s3689_s20 = smov 120  }
 0x20e   : > { %732 = vrot.lane.b32.xlu1 %v3141_v56, %s3675_s19  ;;  %756 = vrot.lane.b32.xlu0 %v3141_v56, %s3682_s24  ;;  %s2397_s19 = sshll.u32 %s3699_s30, 6 }
 0x212   : > { %780 = vrot.lane.b32.xlu1 %v3141_v56, %s3683_s27  ;;  %804 = vrot.lane.b32.xlu0 %v3141_v56, %s3684_s15 }
 0x216   : > { %798 = vrot.lane.b32.xlu1 %v3141_v56, %s3685_s21  ;;  %750 = vrot.lane.b32.xlu0 %v3141_v56, %s3686_s22 }
 0x21a   : > { %742 = vrot.lane.b32.xlu1 %v3171_v4, %s3678_s18  ;;  %766 = vrot.lane.b32.xlu0 %v3171_v4, %s2959_s11  ;;  %s3189_s18 = scalar_lea.vmem %s3657_s3, %s2396_s26 }
 0x21b   : > { %v2817_v5 = vld [vmem:[%s3189_s18 + $0x4] ss:$16 sps:$4 sm:$0xff]   ;;  %v2820_v6 = vld [vmem:[%s3189_s18 + $0xc] ss:$16 sps:$4 sm:$0xff]   ;;  %v2815_v43 = vld [vmem:[%s3189_s18] ss:$16 sps:$4 sm:$0xff]  }
 0x21c   : > { %996 = vmatprep.mubr.bf16.mxu0 %v2817_v5  ;;  %1061 = vmatprep.mubr.bf16.mxu1 %v2820_v6  ;;  %v2821_v44 = vld [vmem:[%s3189_s18 + $0x24] ss:$16 sps:$4 sm:$0xff]   ;;  %v2818_v47 = vld [vmem:[%s3189_s18 + $0x8] ss:$16 sps:$4 sm:$0xff]   ;;  %v2824_v48 = vld [vmem:[%s3189_s18 + $0x2c] ss:$16 sps:$4 sm:$0xff]  }
 0x21d   : > { %v2823_v49 = vld [vmem:[%s3189_s18 + $0x20] ss:$16 sps:$4 sm:$0xff]   ;;  %v2827_v50 = vld [vmem:[%s3189_s18 + $0x44] ss:$16 sps:$4 sm:$0xff]   ;;  %v2826_v51 = vld [vmem:[%s3189_s18 + $0x28] ss:$16 sps:$4 sm:$0xff]  }
 0x21e   : > { %790 = vrot.lane.b32.xlu1 %v3171_v4, %s2969_s23  ;;  %814 = vrot.lane.b32.xlu0 %v3171_v4, %s2964_s17  ;;  %s3687_s23 = smov 114   ;;  %s3688_s17 = smov 127   ;;  %v2830_v52 = vld [vmem:[%s3189_s18 + $0x4c] ss:$16 sps:$4 sm:$0xff]   ;;  %v2829_v53 = vld [vmem:[%s3189_s18 + $0x40] ss:$16 sps:$4 sm:$0xff]  }
 0x21f   : > { %v2833_v54 = vld [vmem:[%s3189_s18 + $0x64] ss:$16 sps:$4 sm:$0xff]   ;;  %v2832_v55 = vld [vmem:[%s3189_s18 + $0x48] ss:$16 sps:$4 sm:$0xff]   ;;  %v2835_v57 = vld [vmem:[%s3189_s18 + $0x60] ss:$16 sps:$4 sm:$0xff]  }
 0x220   : > { %v2838_v58 = vld [vmem:[%s3189_s18 + $0x68] ss:$16 sps:$4 sm:$0xff]  }
 0x222   : > { %736 = vrot.lane.b32.xlu1 %v3171_v4, %s2962_s14  ;;  %760 = vrot.lane.b32.xlu0 %v3171_v4, %s2961_s13 }
 0x226   : > { %784 = vrot.lane.b32.xlu1 %v3171_v4, %s2970_s25  ;;  %808 = vrot.lane.b32.xlu0 %v3171_v4, %s3687_s23  ;;  %s462_s23 = scalar_lea.vmem %s3658_s4, %s2397_s19 }
 0x227   : > { %v843_v7 = vld [vmem:[%s462_s23 + $0x38] sm:$0xff]  ;;  %v842_v8 = vld [vmem:[%s462_s23 + $0x30] sm:$0xff]  ;;  %v841_v9 = vld [vmem:[%s462_s23 + $0x28] sm:$0xff] }
 0x228   : > { %v840_v10 = vld [vmem:[%s462_s23 + $0x20] sm:$0xff]  ;;  %v839_v11 = vld [vmem:[%s462_s23 + $0x18] sm:$0xff]  ;;  %v838_v12 = vld [vmem:[%s462_s23 + $0x10] sm:$0xff] }
 0x229   : > { %v837_v13 = vld [vmem:[%s462_s23 + $0x8] sm:$0xff]  ;;  %v836_v14 = vld [vmem:[%s462_s23] sm:$0xff] }
 0x22a   : > { %730 = vrot.lane.b32.xlu1 %v3171_v4, %s3688_s17  ;;  %754 = vrot.lane.b32.xlu0 %v3171_v4, %s3682_s24 }
 0x22e   : > { %778 = vrot.lane.b32.xlu1 %v3171_v4, %s3683_s27  ;;  %802 = vrot.lane.b32.xlu0 %v3171_v4, %s3684_s15  ;;  %s2728_s27 = smul.u32 192, %s3699_s30 }
 0x230   : > { %s3287_s19 = scalar_lea.vmem %s3659_s5, %s2728_s27 }
 0x232   : > { %748 = vrot.lane.b32.xlu1 %v3171_v4, %s3686_s22  ;;  %774 = vrot.lane.b32.xlu0 %v3141_v56, %s3689_s20 }
 0x236   : > { %772 = vrot.lane.b32.xlu1 %v3171_v4, %s3689_s20  ;;  %796 = vrot.lane.b32.xlu0 %v3171_v4, %s3685_s21 }
 0x23a   : > { %881 = vperm.xlu1 %2804, %v843_v7   ;;  %876 = vperm.xlu0 %2805, %v842_v8  }
 0x23e   : > { %871 = vperm.xlu1 %2804, %v841_v9   ;;  %866 = vperm.xlu0 %2805, %v840_v10  }
 0x242   : > { %861 = vperm.xlu1 %2804, %v839_v11   ;;  %856 = vperm.xlu0 %2805, %v838_v12  }
 0x246   : > { %851 = vperm.xlu1 %2804, %v837_v13   ;;  %846 = vperm.xlu0 %2805, %v836_v14  }
 0x270   : > { %v745_v15 = vpop.permute.xlu1 %744  ;;  %v769_v16 = vpop.permute.xlu0 %768 }
 0x271   : > { %2436 = vmatprep.subr.bf16.mxu0 %v769_v16 }
 0x272   : > { %2437 = vmatpush3.bf16.msra.mxu0 %v745_v15 }
 0x274   : > { %v793_v17 = vpop.permute.xlu1 %792  ;;  %v817_v18 = vpop.permute.xlu0 %816 }
 0x275   : > { %2476 = vmatprep.subr.bf16.mxu1 %v817_v18 }
 0x276   : > { %2477 = vmatpush3.bf16.msra.mxu1 %v793_v17 }
 0x278   : > { %v739_v19 = vpop.permute.xlu1 %738  ;;  %v763_v20 = vpop.permute.xlu0 %762 }
 0x27c   : > { %v787_v21 = vpop.permute.xlu1 %786  ;;  %v811_v22 = vpop.permute.xlu0 %810 }
 0x280   : > { %v733_v23 = vpop.permute.xlu1 %732  ;;  %v757_v24 = vpop.permute.xlu0 %756 }
 0x284   : > { %v781_v25 = vpop.permute.xlu1 %780  ;;  %v805_v26 = vpop.permute.xlu0 %804 }
 0x288   : > { %v799_v27 = vpop.permute.xlu1 %798  ;;  %v751_v28 = vpop.permute.xlu0 %750 }
 0x28c   : > { %v743_v29 = vpop.permute.xlu1 %742  ;;  %v767_v30 = vpop.permute.xlu0 %766 }
 0x28d   : > { %2438 = vmatprep.subr.bf16.mxu0 %v767_v30 }
 0x28e   : > { %2439 = vmatpush3.bf16.msra.mxu0 %v743_v29 }
 0x28f   : > { %2440 = vmatprep.subr.bf16.mxu0 %v763_v20 }
 0x290   : > { %v791_v31 = vpop.permute.xlu1 %790  ;;  %v815_v32 = vpop.permute.xlu0 %814 }
 0x291   : > { %2478 = vmatprep.subr.bf16.mxu1 %v815_v32 }
 0x292   : > { %2441 = vmatpush3.bf16.msra.mxu0 %v739_v19  ;;  %2479 = vmatpush3.bf16.msra.mxu1 %v791_v31 }
 0x293   : > { %2480 = vmatprep.subr.bf16.mxu1 %v811_v22 }
 0x294   : > { %v737_v33 = vpop.permute.xlu1 %736  ;;  %v761_v34 = vpop.permute.xlu0 %760 }
 0x295   : > { %2442 = vmatprep.subr.bf16.mxu0 %v761_v34 }
 0x296   : > { %2443 = vmatpush3.bf16.msra.mxu0 %v737_v33  ;;  %2481 = vmatpush3.bf16.msra.mxu1 %v787_v21 }
 0x297   : > { %2444 = vmatprep.subr.bf16.mxu0 %v757_v24 }
 0x298   : > { %v785_v35 = vpop.permute.xlu1 %784  ;;  %v809_v36 = vpop.permute.xlu0 %808 }
 0x299   : > { %2482 = vmatprep.subr.bf16.mxu1 %v809_v36 }
 0x29a   : > { %2445 = vmatpush3.bf16.msra.mxu0 %v733_v23  ;;  %2483 = vmatpush3.bf16.msra.mxu1 %v785_v35 }
 0x29b   : > { %2484 = vmatprep.subr.bf16.mxu1 %v805_v26 }
 0x29c   : > { %v731_v37 = vpop.permute.xlu1 %730  ;;  %v755_v38 = vpop.permute.xlu0 %754 }
 0x29d   : > { %2446 = vmatprep.subr.bf16.mxu0 %v755_v38 }
 0x29e   : > { %2447 = vmatpush3.bf16.msra.mxu0 %v731_v37  ;;  %2485 = vmatpush3.bf16.msra.mxu1 %v781_v25 }
 0x29f   : > { %2448 = vmatprep.subr.bf16.mxu0 %v751_v28 }
 0x2a0   : > { %v779_v39 = vpop.permute.xlu1 %778  ;;  %v803_v40 = vpop.permute.xlu0 %802 }
 0x2a1   : > { %2486 = vmatprep.subr.bf16.mxu1 %v803_v40 }
 0x2a2   : > { %2449 = vmatpush3.bf16.msra.mxu0 %v3141_v56  ;;  %2487 = vmatpush3.bf16.msra.mxu1 %v779_v39  ;;  %v2836_v56 = vld [vmem:[%s3189_s18 + $0x6c] ss:$16 sps:$4 sm:$0xff]   ;;  %s3690_s18 = smov 125  }
 0x2a3   : > { %2488 = vmatprep.subr.bf16.mxu1 %v799_v27 }
 0x2a4   : > { %v749_v41 = vpop.permute.xlu1 %748  ;;  %v775_v42 = vpop.permute.xlu0 %774 }
 0x2a5   : > { %2450 = vmatprep.subr.bf16.mxu0 %v749_v41 }
 0x2a6   : > { %2451 = vmatpush3.bf16.msra.mxu0 %v3171_v4  ;;  %2489 = vmatpush3.bf16.msra.mxu1 %v775_v42 }
 0x2a8   : > { %v773_v45 = vpop.permute.xlu1 %772  ;;  %v797_v46 = vpop.permute.xlu0 %796 }
 0x2a9   : > { %997 = vmatmul.mubr.bf16.vlgmr.msra.gmra.mxu0 %v2815_v43  ;;  %2490 = vmatprep.subr.bf16.mxu1 %v797_v46 }
 0x2aa   : > { %2491 = vmatpush3.bf16.msra.mxu1 %v773_v45  ;;  %1004 = vmatprep.mubr.bf16.mxu0 %v2821_v44 }
 0x2ad   : > { %1062 = vmatmul.mubr.bf16.vlgmr.msra.gmra.mxu1 %v2818_v47 }
 0x2ae   : > { %1069 = vmatprep.mubr.bf16.mxu1 %v2824_v48 }
 0x2b1   : > { %1005 = vmatmul.mubr.bf16.gmra.mxu0 %v2823_v49 }
 0x2b2   : > { %1012 = vmatprep.mubr.bf16.mxu0 %v2827_v50 }
 0x2b5   : > { %1070 = vmatmul.mubr.bf16.gmra.mxu1 %v2826_v51  ;;  %v3233_v59 = vpop.permute.xlu0 %876  ;;  %v3235_v60 = vpop.permute.xlu1 %881 }
 0x2b6   : > { %1077 = vmatprep.mubr.bf16.mxu1 %v2830_v52 }
 0x2b9   : > { %1013 = vmatmul.mubr.bf16.gmra.mxu0 %v2829_v53  ;;  %v867_v61 = vpop.permute.xlu0 %866  ;;  %v872_v62 = vpop.permute.xlu1 %871 }
 0x2ba   : > { %1020 = vmatprep.mubr.bf16.mxu0 %v2833_v54 }
 0x2bd   : > { %1078 = vmatmul.mubr.bf16.gmra.mxu1 %v2832_v55  ;;  %v857_v0 = vpop.permute.xlu0 %856  ;;  %v862_v2 = vpop.permute.xlu1 %861 }
 0x2be   : > { %1085 = vmatprep.mubr.bf16.mxu1 %v2836_v56 }
 0x2c1   : > { %1021 = vmatmul.mubr.bf16.gmra.mxu0 %v2835_v57  ;;  %v847_v8 = vpop.permute.xlu0 %846  ;;  %v852_v13 = vpop.permute.xlu1 %851 }
 0x2c5   : > { %1086 = vmatmul.mubr.bf16.gmra.mxu1 %v2838_v58 }
 0x369   : > { %v2452_v63 = vpop.f32.mrf.mxu0 }
 0x36b   : > { %v2453_v1 = vpop.f32.mrf.mxu0 }
 0x36c   : > { %v2454_v5 = vadd.f32 %v2453_v1, %v2452_v63 }
 0x36d   : > { %v2455_v3 = vpop.f32.mrf.mxu0  ;;  %v2492_v4 = vpop.f32.mrf.mxu1 }
 0x36e   : > { %v999_v14 = vadd.f32 %v2454_v5, %v847_v8 }
 0x36f   : > { %v2456_v6 = vpop.f32.mrf.mxu0  ;;  %v2493_v7 = vpop.f32.mrf.mxu1 }
 0x370   : > { %v2457_v9 = vadd.f32 %v2456_v6, %v2455_v3  ;;  %v2494_v10 = vadd.f32 %v2493_v7, %v2492_v4 }
 0x371   : > { %v2458_v11 = vpop.f32.mrf.mxu0  ;;  %v2495_v12 = vpop.f32.mrf.mxu1 }
 0x372   : > { %v1002_v17 = vadd.f32 %v2457_v9, %v852_v13  ;;  %v1064_v18 = vadd.f32 %v2494_v10, %v999_v14 }
 0x373   : > { %v2459_v15 = vpop.f32.mrf.mxu0  ;;  %v2496_v16 = vpop.f32.mrf.mxu1 }
 0x374   : > { %v2497_v19 = vadd.f32 %v2496_v16, %v2495_v12  ;;  %v2460_v22 = vadd.f32 %v2459_v15, %v2458_v11  ;;  %v1094_v26 = vmax.f32 %v1064_v18, 0.0  ;;  %v2844_v16 = vld [vmem:[%s3287_s19 + $0xc] ss:$16 sps:$4 sm:$0xff]  }
 0x375   : > { %v2461_v20 = vpop.f32.mrf.mxu0  ;;  %v2498_v21 = vpop.f32.mrf.mxu1  ;;  %1523 = vmatprep.mubr.bf16.mxu1 %v2844_v16 }
 0x376   : > { %v1067_v23 = vadd.f32 %v2497_v19, %v1002_v17  ;;  %v1007_v32 = vadd.f32 %v2460_v22, %v857_v0 }
 0x377   : > { %v2462_v24 = vpop.f32.mrf.mxu0  ;;  %v2499_v25 = vpop.f32.mrf.mxu1 }
 0x378   : > { %v1095_v27 = vmax.f32 %v1067_v23, 0.0  ;;  %v2463_v28 = vadd.f32 %v2462_v24, %v2461_v20  ;;  %v2500_v29 = vadd.f32 %v2499_v25, %v2498_v21 }
 0x379   : > { %v2464_v30 = vpop.f32.mrf.mxu0  ;;  %v2501_v31 = vpop.f32.mrf.mxu1 }
 0x37a   : > { %v3237_v33 = vpack.c.bf16 %v1095_v27, %v1094_v26  ;;  %v1010_v36 = vadd.f32 %v2463_v28, %v862_v2  ;;  %v1072_v37 = vadd.f32 %v2500_v29, %v1007_v32 }
 0x37b   : > { %v2465_v34 = vpop.f32.mrf.mxu0  ;;  %v2502_v35 = vpop.f32.mrf.mxu1 }
 0x37c   : > { %v2503_v38 = vadd.f32 %v2502_v35, %v2501_v31  ;;  %1110 = vrot.lane.b32.xlu1 %v3237_v33, %s3688_s17  ;;  %1134 = vrot.lane.b32.xlu0 %v3237_v33, %s3690_s18  ;;  %v2466_v41 = vadd.f32 %v2465_v34, %v2464_v30  ;;  %v1096_v45 = vmax.f32 %v1072_v37, 0.0 }
 0x37d   : > { %v2467_v39 = vpop.f32.mrf.mxu0  ;;  %v2504_v40 = vpop.f32.mrf.mxu1 }
 0x37e   : > { %v1075_v42 = vadd.f32 %v2503_v38, %v1010_v36  ;;  %v1015_v51 = vadd.f32 %v2466_v41, %v867_v61 }
 0x37f   : > { %v2468_v43 = vpop.f32.mrf.mxu0  ;;  %v2505_v44 = vpop.f32.mrf.mxu1 }
 0x380   : > { %v1097_v46 = vmax.f32 %v1075_v42, 0.0  ;;  %v2469_v47 = vadd.f32 %v2468_v43, %v2467_v39  ;;  %v2506_v48 = vadd.f32 %v2505_v44, %v2504_v40 }
 0x381   : > { %v2470_v49 = vpop.f32.mrf.mxu0  ;;  %v2507_v50 = vpop.f32.mrf.mxu1 }
 0x382   : > { %v3243_v52 = vpack.c.bf16 %v1097_v46, %v1096_v45  ;;  %v1018_v55 = vadd.f32 %v2469_v47, %v872_v62  ;;  %v1080_v56 = vadd.f32 %v2506_v48, %v1015_v51 }
 0x383   : > { %v2471_v53 = vpop.f32.mrf.mxu0  ;;  %v2508_v54 = vpop.f32.mrf.mxu1 }
 0x384   : > { %v2509_v57 = vadd.f32 %v2508_v54, %v2507_v50  ;;  %1112 = vrot.lane.b32.xlu1 %v3243_v52, %s3688_s17  ;;  %1136 = vrot.lane.b32.xlu0 %v3243_v52, %s3690_s18  ;;  %v2472_v0 = vadd.f32 %v2471_v53, %v2470_v49  ;;  %v1098_v61 = vmax.f32 %v1080_v56, 0.0 }
 0x385   : > { %v2473_v58 = vpop.f32.mrf.mxu0  ;;  %v2510_v63 = vpop.f32.mrf.mxu1 }
 0x386   : > { %v1083_v1 = vadd.f32 %v2509_v57, %v1018_v55  ;;  %v1023_v7 = vadd.f32 %v2472_v0, %v3233_v59  ;;  %v2839_v57 = vld [vmem:[%s3287_s19] ss:$16 sps:$4 sm:$0xff]  }
 0x387   : > { %v2474_v2 = vpop.f32.mrf.mxu0  ;;  %v2511_v3 = vpop.f32.mrf.mxu1 }
 0x388   : > { %v1099_v4 = vmax.f32 %v1083_v1, 0.0  ;;  %v2475_v5 = vadd.f32 %v2474_v2, %v2473_v58  ;;  %v2512_v6 = vadd.f32 %v2511_v3, %v2510_v63  ;;  %1160 = vrot.lane.b32.xlu1 %v3243_v52, %s3682_s24  ;;  %1184 = vrot.lane.b32.xlu0 %v3243_v52, %s2959_s11  ;;  %v2845_v58 = vld [vmem:[%s3287_s19 + $0x24] ss:$16 sps:$4 sm:$0xff]   ;;  %v2848_v1 = vld [vmem:[%s3287_s19 + $0x2c] ss:$16 sps:$4 sm:$0xff]  }
 0x389   : > { %v2513_v62 = vpop.f32.mrf.mxu1  ;;  %v2847_v2 = vld [vmem:[%s3287_s19 + $0x20] ss:$16 sps:$4 sm:$0xff]   ;;  %v2850_v3 = vld [vmem:[%s3287_s19 + $0x28] ss:$16 sps:$4 sm:$0xff]  }
 0x38a   : > { %v3254_v8 = vpack.c.bf16 %v1099_v4, %v1098_v61  ;;  %v1026_v10 = vadd.f32 %v2475_v5, %v3235_v60  ;;  %v1088_v11 = vadd.f32 %v2512_v6, %v1023_v7  ;;  %v2841_v60 = vld [vmem:[%s3287_s19 + $0x4] ss:$16 sps:$4 sm:$0xff]   ;;  %v2854_v61 = vld [vmem:[%s3287_s19 + $0x4c] ss:$16 sps:$4 sm:$0xff]   ;;  %v2853_v4 = vld [vmem:[%s3287_s19 + $0x40] ss:$16 sps:$4 sm:$0xff]  }
 0x38b   : > { %v2514_v9 = vpop.f32.mrf.mxu1  ;;  %1442 = vmatprep.mubr.bf16.mxu0 %v2841_v60  ;;  %v2857_v5 = vld [vmem:[%s3287_s19 + $0x64] ss:$16 sps:$4 sm:$0xff]   ;;  %v2856_v6 = vld [vmem:[%s3287_s19 + $0x48] ss:$16 sps:$4 sm:$0xff]   ;;  %v2859_v7 = vld [vmem:[%s3287_s19 + $0x60] ss:$16 sps:$4 sm:$0xff]  }
 0x38c   : > { %v2515_v12 = vadd.f32 %v2514_v9, %v2513_v62  ;;  %1114 = vrot.lane.b32.xlu1 %v3254_v8, %s3688_s17  ;;  %1138 = vrot.lane.b32.xlu0 %v3254_v8, %s3690_s18  ;;  %v1100_v14 = vmax.f32 %v1088_v11, 0.0  ;;  %v2860_v62 = vld [vmem:[%s3287_s19 + $0x6c] ss:$16 sps:$4 sm:$0xff]   ;;  %v2862_v9 = vld [vmem:[%s3287_s19 + $0x68] ss:$16 sps:$4 sm:$0xff]  }
 0x38d   : > { %v2865_v11 = vld [vmem:[%s3287_s19 + $0x80] ss:$16 sps:$4 sm:$0xff]  }
 0x38e   : > { %v1091_v13 = vadd.f32 %v2515_v12, %v1026_v10  ;;  %v2866_v10 = vld [vmem:[%s3287_s19 + $0x8c] ss:$16 sps:$4 sm:$0xff]   ;;  %v2869_v12 = vld [vmem:[%s3287_s19 + $0xa4] ss:$16 sps:$4 sm:$0xff]  }
 0x390   : > { %v1101_v15 = vmax.f32 %v1091_v13, 0.0  ;;  %1162 = vrot.lane.b32.xlu1 %v3254_v8, %s3682_s24  ;;  %1186 = vrot.lane.b32.xlu0 %v3254_v8, %s2959_s11  ;;  %v2868_v13 = vld [vmem:[%s3287_s19 + $0x88] ss:$16 sps:$4 sm:$0xff]  }
 0x392   : > { %v3265_v59 = vpack.c.bf16 %v1101_v15, %v1100_v14  ;;  %v2872_v14 = vld [vmem:[%s3287_s19 + $0xac] ss:$16 sps:$4 sm:$0xff]   ;;  %v2871_v15 = vld [vmem:[%s3287_s19 + $0xa0] ss:$16 sps:$4 sm:$0xff]  }
 0x394   : > { %1116 = vrot.lane.b32.xlu1 %v3265_v59, %s3688_s17  ;;  %1140 = vrot.lane.b32.xlu0 %v3265_v59, %s3690_s18 }
 0x398   : > { %1164 = vrot.lane.b32.xlu1 %v3265_v59, %s3682_s24  ;;  %1188 = vrot.lane.b32.xlu0 %v3265_v59, %s2959_s11 }
 0x39c   : > { %1158 = vrot.lane.b32.xlu1 %v3237_v33, %s3682_s24  ;;  %1182 = vrot.lane.b32.xlu0 %v3237_v33, %s2959_s11  ;;  %s2729_s11 = smul.u32 96, %s3699_s30 }
 0x39e   : > { %s472_s26 = scalar_lea.vmem %s3660_s6, %s2729_s11  ;;  %s481_s25 = scalar_lea.vmem %s3662_s8, %s2729_s11 }
 0x39f   : > { %v1224_v17 = vld [vmem:[%s472_s26 + $0x30] sm:$0xff]  ;;  %v1218_v18 = vld [vmem:[%s472_s26] sm:$0xff]  ;;  %v1225_v19 = vld [vmem:[%s472_s26 + $0x38] sm:$0xff] }
 0x3a0   : > { %1126 = vrot.lane.b32.xlu1 %v3254_v8, %s2962_s14  ;;  %1174 = vrot.lane.b32.xlu0 %v3254_v8, %s2961_s13  ;;  %v1219_v20 = vld [vmem:[%s472_s26 + $0x8] sm:$0xff]  ;;  %v1226_v21 = vld [vmem:[%s472_s26 + $0x40] sm:$0xff] }
 0x3a1   : > { %v1220_v22 = vld [vmem:[%s472_s26 + $0x10] sm:$0xff]  ;;  %v1227_v23 = vld [vmem:[%s472_s26 + $0x48] sm:$0xff]  ;;  %v1221_v24 = vld [vmem:[%s472_s26 + $0x18] sm:$0xff] }
 0x3a2   : > { %v1228_v25 = vld [vmem:[%s472_s26 + $0x50] sm:$0xff]  ;;  %v1222_v26 = vld [vmem:[%s472_s26 + $0x20] sm:$0xff]  ;;  %v1229_v27 = vld [vmem:[%s472_s26 + $0x58] sm:$0xff] }
 0x3a3   : > { %v1223_v28 = vld [vmem:[%s472_s26 + $0x28] sm:$0xff] }
 0x3a4   : > { %1176 = vrot.lane.b32.xlu1 %v3265_v59, %s2961_s13  ;;  %1128 = vrot.lane.b32.xlu0 %v3265_v59, %s2962_s14 }
 0x3a8   : > { %1150 = vrot.lane.b32.xlu1 %v3254_v8, %s3686_s22  ;;  %1152 = vrot.lane.b32.xlu0 %v3265_v59, %s3686_s22 }
 0x3ac   : > { %1172 = vrot.lane.b32.xlu1 %v3243_v52, %s2961_s13  ;;  %1124 = vrot.lane.b32.xlu0 %v3243_v52, %s2962_s14 }
 0x3b0   : > { %1122 = vrot.lane.b32.xlu1 %v3237_v33, %s2962_s14  ;;  %1148 = vrot.lane.b32.xlu0 %v3243_v52, %s3686_s22 }
 0x3b4   : > { %1146 = vrot.lane.b32.xlu1 %v3237_v33, %s3686_s22  ;;  %1170 = vrot.lane.b32.xlu0 %v3237_v33, %s2961_s13 }
 0x3b8   : > { %1262 = vperm.xlu1 %2804, %v1224_v17   ;;  %1232 = vperm.xlu0 %2805, %v1218_v18  }
 0x3bc   : > { %1267 = vperm.xlu1 %2804, %v1225_v19   ;;  %1237 = vperm.xlu0 %2805, %v1219_v20  }
 0x3c0   : > { %1272 = vperm.xlu1 %2804, %v1226_v21   ;;  %1242 = vperm.xlu0 %2805, %v1220_v22  }
 0x3c4   : > { %1277 = vperm.xlu1 %2804, %v1227_v23   ;;  %1247 = vperm.xlu0 %2805, %v1221_v24  }
 0x3c8   : > { %1282 = vperm.xlu1 %2804, %v1228_v25   ;;  %1252 = vperm.xlu0 %2805, %v1222_v26  }
 0x3cc   : > { %1287 = vperm.xlu1 %2804, %v1229_v27   ;;  %1257 = vperm.xlu0 %2805, %v1223_v28  }
 0x3ee   : > { %v1111_v29 = vpop.permute.xlu1 %1110  ;;  %v1135_v30 = vpop.permute.xlu0 %1134 }
 0x3f6   : > { %v1113_v31 = vpop.permute.xlu1 %1112  ;;  %v1137_v32 = vpop.permute.xlu0 %1136 }
 0x3fa   : > { %v1161_v34 = vpop.permute.xlu1 %1160  ;;  %v1185_v35 = vpop.permute.xlu0 %1184 }
 0x3fe   : > { %v1115_v36 = vpop.permute.xlu1 %1114  ;;  %v1139_v37 = vpop.permute.xlu0 %1138 }
 0x402   : > { %v1163_v38 = vpop.permute.xlu1 %1162  ;;  %v1187_v39 = vpop.permute.xlu0 %1186 }
 0x406   : > { %v1117_v40 = vpop.permute.xlu1 %1116  ;;  %v1141_v41 = vpop.permute.xlu0 %1140 }
 0x407   : > { %2516 = vmatprep.subr.bf16.mxu0 %v1141_v41 }
 0x408   : > { %2517 = vmatpush3.bf16.msra.mxu0 %v1117_v40 }
 0x409   : > { %2518 = vmatprep.subr.bf16.mxu0 %v1139_v37 }
 0x40a   : > { %v1165_v42 = vpop.permute.xlu1 %1164  ;;  %v1189_v43 = vpop.permute.xlu0 %1188 }
 0x40b   : > { %2568 = vmatprep.subr.bf16.mxu1 %v1189_v43 }
 0x40c   : > { %2519 = vmatpush3.bf16.msra.mxu0 %v1115_v36  ;;  %2569 = vmatpush3.bf16.msra.mxu1 %v1165_v42 }
 0x40d   : > { %2520 = vmatprep.subr.bf16.mxu0 %v1137_v32  ;;  %2570 = vmatprep.subr.bf16.mxu1 %v1187_v39 }
 0x40e   : > { %v1159_v44 = vpop.permute.xlu1 %1158  ;;  %v1183_v45 = vpop.permute.xlu0 %1182 }
 0x410   : > { %2521 = vmatpush3.bf16.msra.mxu0 %v1113_v31  ;;  %2571 = vmatpush3.bf16.msra.mxu1 %v1163_v38 }
 0x411   : > { %2522 = vmatprep.subr.bf16.mxu0 %v1135_v30  ;;  %2572 = vmatprep.subr.bf16.mxu1 %v1185_v35 }
 0x412   : > { %v1127_v46 = vpop.permute.xlu1 %1126  ;;  %v1175_v47 = vpop.permute.xlu0 %1174 }
 0x414   : > { %2523 = vmatpush3.bf16.msra.mxu0 %v1111_v29  ;;  %2573 = vmatpush3.bf16.msra.mxu1 %v1161_v34 }
 0x415   : > { %2574 = vmatprep.subr.bf16.mxu1 %v1183_v45 }
 0x416   : > { %v1177_v48 = vpop.permute.xlu1 %1176  ;;  %v1129_v49 = vpop.permute.xlu0 %1128 }
 0x417   : > { %2524 = vmatprep.subr.bf16.mxu0 %v1129_v49 }
 0x418   : > { %2525 = vmatpush3.bf16.msra.mxu0 %v3265_v59  ;;  %2575 = vmatpush3.bf16.msra.mxu1 %v1159_v44  ;;  %v2874_v59 = vld [vmem:[%s3287_s19 + $0xa8] ss:$16 sps:$4 sm:$0xff]  }
 0x419   : > { %2526 = vmatprep.subr.bf16.mxu0 %v1127_v46  ;;  %2576 = vmatprep.subr.bf16.mxu1 %v1177_v48 }
 0x41a   : > { %v1151_v50 = vpop.permute.xlu1 %1150  ;;  %v1153_v51 = vpop.permute.xlu0 %1152 }
 0x41c   : > { %2527 = vmatpush3.bf16.msra.mxu0 %v3254_v8  ;;  %2577 = vmatpush3.bf16.msra.mxu1 %v1153_v51  ;;  %v2863_v8 = vld [vmem:[%s3287_s19 + $0x84] ss:$16 sps:$4 sm:$0xff]  }
 0x41d   : > { %2578 = vmatprep.subr.bf16.mxu1 %v1175_v47 }
 0x41e   : > { %v1173_v53 = vpop.permute.xlu1 %1172  ;;  %v1125_v54 = vpop.permute.xlu0 %1124 }
 0x41f   : > { %2528 = vmatprep.subr.bf16.mxu0 %v1125_v54 }
 0x420   : > { %2529 = vmatpush3.bf16.msra.mxu0 %v3243_v52  ;;  %2579 = vmatpush3.bf16.msra.mxu1 %v1151_v50  ;;  %v2842_v52 = vld [vmem:[%s3287_s19 + $0x8] ss:$16 sps:$4 sm:$0xff]  }
 0x421   : > { %2580 = vmatprep.subr.bf16.mxu1 %v1173_v53 }
 0x422   : > { %v1123_v55 = vpop.permute.xlu1 %1122  ;;  %v1149_v56 = vpop.permute.xlu0 %1148 }
 0x423   : > { %2530 = vmatprep.subr.bf16.mxu0 %v1123_v55 }
 0x424   : > { %2531 = vmatpush3.bf16.msra.mxu0 %v3237_v33  ;;  %2581 = vmatpush3.bf16.msra.mxu1 %v1149_v56  ;;  %v2851_v33 = vld [vmem:[%s3287_s19 + $0x44] ss:$16 sps:$4 sm:$0xff]  }
 0x426   : > { %v1147_v63 = vpop.permute.xlu1 %1146  ;;  %v1171_v0 = vpop.permute.xlu0 %1170 }
 0x427   : > { %1443 = vmatmul.mubr.bf16.vlgmr.msra.gmra.mxu0 %v2839_v57  ;;  %2582 = vmatprep.subr.bf16.mxu1 %v1171_v0 }
 0x428   : > { %2583 = vmatpush3.bf16.msra.mxu1 %v1147_v63  ;;  %1450 = vmatprep.mubr.bf16.mxu0 %v2845_v58 }
 0x42b   : > { %1524 = vmatmul.mubr.bf16.vlgmr.msra.gmra.mxu1 %v2842_v52 }
 0x42c   : > { %1531 = vmatprep.mubr.bf16.mxu1 %v2848_v1 }
 0x42f   : > { %1451 = vmatmul.mubr.bf16.gmra.mxu0 %v2847_v2 }
 0x430   : > { %1458 = vmatprep.mubr.bf16.mxu0 %v2851_v33 }
 0x433   : > { %1532 = vmatmul.mubr.bf16.gmra.mxu1 %v2850_v3  ;;  %v1233_v60 = vpop.permute.xlu0 %1232  ;;  %v1263_v54 = vpop.permute.xlu1 %1262 }
 0x434   : > { %1539 = vmatprep.mubr.bf16.mxu1 %v2854_v61 }
 0x437   : > { %1459 = vmatmul.mubr.bf16.gmra.mxu0 %v2853_v4  ;;  %v1238_v17 = vpop.permute.xlu0 %1237 }
 0x438   : > { %1466 = vmatprep.mubr.bf16.mxu0 %v2857_v5 }
 0x43b   : > { %1540 = vmatmul.mubr.bf16.gmra.mxu1 %v2856_v6  ;;  %v1243_v24 = vpop.permute.xlu0 %1242 }
 0x43c   : > { %1547 = vmatprep.mubr.bf16.mxu1 %v2860_v62 }
 0x43f   : > { %1467 = vmatmul.mubr.bf16.gmra.mxu0 %v2859_v7  ;;  %v1248_v40 = vpop.permute.xlu0 %1247  ;;  %v1268_v7 = vpop.permute.xlu1 %1267 }
 0x440   : > { %1474 = vmatprep.mubr.bf16.mxu0 %v2863_v8 }
 0x443   : > { %1548 = vmatmul.mubr.bf16.gmra.mxu1 %v2862_v9  ;;  %v1253_v55 = vpop.permute.xlu0 %1252 }
 0x444   : > { %1555 = vmatprep.mubr.bf16.mxu1 %v2866_v10 }
 0x447   : > { %1475 = vmatmul.mubr.bf16.gmra.mxu0 %v2865_v11  ;;  %v1258_v8 = vpop.permute.xlu0 %1257 }
 0x448   : > { %1482 = vmatprep.mubr.bf16.mxu0 %v2869_v12 }
 0x44b   : > { %1556 = vmatmul.mubr.bf16.gmra.mxu1 %v2868_v13 }
 0x44c   : > { %1563 = vmatprep.mubr.bf16.mxu1 %v2872_v14 }
 0x44f   : > { %1483 = vmatmul.mubr.bf16.gmra.mxu0 %v2871_v15 }
 0x453   : > { %1564 = vmatmul.mubr.bf16.gmra.mxu1 %v2874_v59 }
 0x4e7   : > { %v2532_v16 = vpop.f32.mrf.mxu0 }
 0x4e9   : > { %v2533_v18 = vpop.f32.mrf.mxu0 }
 0x4ea   : > { %v2534_v19 = vadd.f32 %v2533_v18, %v2532_v16 }
 0x4eb   : > { %v2535_v20 = vpop.f32.mrf.mxu0  ;;  %v2584_v21 = vpop.f32.mrf.mxu1 }
 0x4ec   : > { %v1445_v25 = vadd.f32 %v2534_v19, %v1233_v60  ;;  %v1273_v19 = vpop.permute.xlu1 %1272 }
 0x4ed   : > { %v2536_v22 = vpop.f32.mrf.mxu0  ;;  %v2585_v23 = vpop.f32.mrf.mxu1 }
 0x4ee   : > { %v2537_v26 = vadd.f32 %v2536_v22, %v2535_v20  ;;  %v2586_v27 = vadd.f32 %v2585_v23, %v2584_v21 }
 0x4ef   : > { %v2538_v28 = vpop.f32.mrf.mxu0  ;;  %v2587_v29 = vpop.f32.mrf.mxu1 }
 0x4f0   : > { %v3343_v30 = vadd.f32 %v2586_v27, %v1445_v25  ;;  %v1448_v34 = vadd.f32 %v2537_v26, %v1238_v17 }
 0x4f1   : > { %v2539_v31 = vpop.f32.mrf.mxu0  ;;  %v2588_v32 = vpop.f32.mrf.mxu1 }
 0x4f2   : > { %v1572_v35 = vmax.f32 %v3343_v30, 0.0  ;;  %v2540_v36 = vadd.f32 %v2539_v31, %v2538_v28  ;;  %v2589_v37 = vadd.f32 %v2588_v32, %v2587_v29 }
 0x4f3   : > { %v2541_v38 = vpop.f32.mrf.mxu0  ;;  %v2590_v39 = vpop.f32.mrf.mxu1 }
 0x4f4   : > { %v3346_v41 = vadd.f32 %v2589_v37, %v1448_v34  ;;  %1596 = vrot.lane.b32.xlu0 %v1572_v35, %s3688_s17  ;;  %v1453_v44 = vadd.f32 %v2540_v36, %v1243_v24 }
 0x4f5   : > { %v2542_v42 = vpop.f32.mrf.mxu0  ;;  %v2591_v43 = vpop.f32.mrf.mxu1 }
 0x4f6   : > { %v1573_v45 = vmax.f32 %v3346_v41, 0.0  ;;  %v2543_v46 = vadd.f32 %v2542_v42, %v2541_v38  ;;  %v2592_v47 = vadd.f32 %v2591_v43, %v2590_v39  ;;  %v1278_v38 = vpop.permute.xlu1 %1277 }
 0x4f7   : > { %v2544_v48 = vpop.f32.mrf.mxu0  ;;  %v2593_v49 = vpop.f32.mrf.mxu1 }
 0x4f8   : > { %v3352_v50 = vadd.f32 %v2592_v47, %v1453_v44  ;;  %1598 = vrot.lane.b32.xlu0 %v1573_v45, %s3688_s17  ;;  %v1456_v56 = vadd.f32 %v2543_v46, %v1248_v40 }
 0x4f9   : > { %v2545_v51 = vpop.f32.mrf.mxu0  ;;  %v2594_v53 = vpop.f32.mrf.mxu1 }
 0x4fa   : > { %v1574_v57 = vmax.f32 %v3352_v50, 0.0  ;;  %v2546_v58 = vadd.f32 %v2545_v51, %v2544_v48  ;;  %v2595_v63 = vadd.f32 %v2594_v53, %v2593_v49 }
 0x4fb   : > { %v2547_v0 = vpop.f32.mrf.mxu0  ;;  %v2596_v52 = vpop.f32.mrf.mxu1 }
 0x4fc   : > { %v3358_v1 = vadd.f32 %v2595_v63, %v1456_v56  ;;  %1600 = vrot.lane.b32.xlu0 %v1574_v57, %s3688_s17  ;;  %v1461_v3 = vadd.f32 %v2546_v58, %v1253_v55  ;;  %v1283_v55 = vpop.permute.xlu1 %1282 }
 0x4fd   : > { %v2548_v2 = vpop.f32.mrf.mxu0  ;;  %v2597_v33 = vpop.f32.mrf.mxu1 }
 0x4fe   : > { %v1575_v61 = vmax.f32 %v3358_v1, 0.0  ;;  %v2549_v4 = vadd.f32 %v2548_v2, %v2547_v0  ;;  %v2598_v5 = vadd.f32 %v2597_v33, %v2596_v52 }
 0x4ff   : > { %v2550_v6 = vpop.f32.mrf.mxu0  ;;  %v2599_v62 = vpop.f32.mrf.mxu1 }
 0x500   : > { %v3364_v9 = vadd.f32 %v2598_v5, %v1461_v3  ;;  %1602 = vrot.lane.b32.xlu0 %v1575_v61, %s3688_s17  ;;  %v1464_v12 = vadd.f32 %v2549_v4, %v1258_v8 }
 0x501   : > { %v2551_v10 = vpop.f32.mrf.mxu0  ;;  %v2600_v11 = vpop.f32.mrf.mxu1 }
 0x502   : > { %v1576_v13 = vmax.f32 %v3364_v9, 0.0  ;;  %v2552_v14 = vadd.f32 %v2551_v10, %v2550_v6  ;;  %v2601_v15 = vadd.f32 %v2600_v11, %v2599_v62  ;;  %v1288_v11 = vpop.permute.xlu1 %1287 }
 0x503   : > { %v2553_v59 = vpop.f32.mrf.mxu0  ;;  %v2602_v60 = vpop.f32.mrf.mxu1 }
 0x504   : > { %v3370_v16 = vadd.f32 %v2601_v15, %v1464_v12  ;;  %1604 = vrot.lane.b32.xlu0 %v1576_v13, %s3688_s17  ;;  %v1469_v20 = vadd.f32 %v2552_v14, %v1263_v54 }
 0x505   : > { %v2554_v17 = vpop.f32.mrf.mxu0  ;;  %v2603_v18 = vpop.f32.mrf.mxu1 }
 0x506   : > { %v1577_v21 = vmax.f32 %v3370_v16, 0.0  ;;  %v2555_v22 = vadd.f32 %v2554_v17, %v2553_v59  ;;  %v2604_v23 = vadd.f32 %v2603_v18, %v2602_v60 }
 0x507   : > { %v2556_v24 = vpop.f32.mrf.mxu0  ;;  %v2605_v25 = vpop.f32.mrf.mxu1 }
 0x508   : > { %v3376_v26 = vadd.f32 %v2604_v23, %v1469_v20  ;;  %1606 = vrot.lane.b32.xlu0 %v1577_v21, %s3688_s17  ;;  %v1472_v29 = vadd.f32 %v2555_v22, %v1268_v7 }
 0x509   : > { %v2557_v27 = vpop.f32.mrf.mxu0  ;;  %v2606_v28 = vpop.f32.mrf.mxu1 }
 0x50a   : > { %v1578_v31 = vmax.f32 %v3376_v26, 0.0  ;;  %v2558_v32 = vadd.f32 %v2557_v27, %v2556_v24  ;;  %v2607_v34 = vadd.f32 %v2606_v28, %v2605_v25 }
 0x50b   : > { %v2559_v36 = vpop.f32.mrf.mxu0  ;;  %v2608_v37 = vpop.f32.mrf.mxu1 }
 0x50c   : > { %v3382_v39 = vadd.f32 %v2607_v34, %v1472_v29  ;;  %1608 = vrot.lane.b32.xlu1 %v1578_v31, %s3688_s17  ;;  %v1477_v43 = vadd.f32 %v2558_v32, %v1273_v19 }
 0x50d   : > { %v2560_v40 = vpop.f32.mrf.mxu0  ;;  %v2609_v42 = vpop.f32.mrf.mxu1 }
 0x50e   : > { %v1579_v44 = vmax.f32 %v3382_v39, 0.0  ;;  %v2561_v46 = vadd.f32 %v2560_v40, %v2559_v36  ;;  %v2610_v47 = vadd.f32 %v2609_v42, %v2608_v37 }
 0x50f   : > { %v2562_v48 = vpop.f32.mrf.mxu0  ;;  %v2611_v49 = vpop.f32.mrf.mxu1 }
 0x510   : > { %v3388_v51 = vadd.f32 %v2610_v47, %v1477_v43  ;;  %1610 = vrot.lane.b32.xlu1 %v1579_v44, %s3688_s17  ;;  %v1480_v56 = vadd.f32 %v2561_v46, %v1278_v38 }
 0x511   : > { %v2563_v53 = vpop.f32.mrf.mxu0  ;;  %v2612_v54 = vpop.f32.mrf.mxu1 }
 0x512   : > { %v1580_v58 = vmax.f32 %v3388_v51, 0.0  ;;  %v2564_v63 = vadd.f32 %v2563_v53, %v2562_v48  ;;  %v2613_v0 = vadd.f32 %v2612_v54, %v2611_v49 }
 0x513   : > { %v2565_v52 = vpop.f32.mrf.mxu0  ;;  %v2614_v2 = vpop.f32.mrf.mxu1 }
 0x514   : > { %v1561_v33 = vadd.f32 %v2613_v0, %v1480_v56  ;;  %1612 = vrot.lane.b32.xlu1 %v1580_v58, %s3688_s17  ;;  %v1485_v5 = vadd.f32 %v2564_v63, %v1283_v55 }
 0x515   : > { %v2566_v3 = vpop.f32.mrf.mxu0  ;;  %v2615_v4 = vpop.f32.mrf.mxu1 }
 0x516   : > { %v1581_v6 = vmax.f32 %v1561_v33, 0.0  ;;  %v2567_v62 = vadd.f32 %v2566_v3, %v2565_v52  ;;  %v2616_v7 = vadd.f32 %v2615_v4, %v2614_v2 }
 0x517   : > { %v2617_v8 = vpop.f32.mrf.mxu1 }
 0x518   : > { %v1566_v10 = vadd.f32 %v2616_v7, %v1485_v5  ;;  %1614 = vrot.lane.b32.xlu1 %v1581_v6, %s3688_s17  ;;  %v1488_v14 = vadd.f32 %v2567_v62, %v1288_v11 }
 0x519   : > { %v2618_v12 = vpop.f32.mrf.mxu1 }
 0x51a   : > { %v1582_v15 = vmax.f32 %v1566_v10, 0.0  ;;  %v2619_v59 = vadd.f32 %v2618_v12, %v2617_v8 }
 0x51c   : > { %v1569_v60 = vadd.f32 %v2619_v59, %v1488_v14  ;;  %1616 = vrot.lane.b32.xlu1 %v1582_v15, %s3688_s17 }
 0x51e   : > { %v1583_v17 = vmax.f32 %v1569_v60, 0.0 }
 0x520   : > { %1618 = vrot.lane.b32.xlu1 %v1583_v17, %s3688_s17 }
 0x566   : > { %v1597_v18 = vpop.permute.xlu0 %1596 }
 0x567   : > { %v1633_v19 = vsel %vm1632_vm0, %v1597_v18, 0.0 }
 0x568   : > { %v1645_v20 = vmax.f32 %v1572_v35, %v1633_v19 }
 0x56a   : > { %1669 = vrot.lane.b32.xlu0 %v1645_v20, %s2962_s14  ;;  %v1599_v22 = vpop.permute.xlu0 %1598 }
 0x56b   : > { %v1634_v23 = vsel %vm1632_vm0, %v1599_v22, 0.0 }
 0x56c   : > { %v1646_v24 = vmax.f32 %v1573_v45, %v1634_v23 }
 0x56e   : > { %1671 = vrot.lane.b32.xlu0 %v1646_v24, %s2962_s14  ;;  %v1601_v25 = vpop.permute.xlu0 %1600 }
 0x56f   : > { %v1635_v27 = vsel %vm1632_vm0, %v1601_v25, 0.0 }
 0x570   : > { %v1647_v28 = vmax.f32 %v1574_v57, %v1635_v27 }
 0x572   : > { %1673 = vrot.lane.b32.xlu0 %v1647_v28, %s2962_s14  ;;  %v1603_v30 = vpop.permute.xlu0 %1602 }
 0x573   : > { %v1636_v35 = vsel %vm1632_vm0, %v1603_v30, 0.0 }
 0x574   : > { %v1648_v29 = vmax.f32 %v1575_v61, %v1636_v35 }
 0x576   : > { %1675 = vrot.lane.b32.xlu0 %v1648_v29, %s2962_s14  ;;  %v1605_v41 = vpop.permute.xlu0 %1604 }
 0x577   : > { %v1637_v45 = vsel %vm1632_vm0, %v1605_v41, 0.0 }
 0x578   : > { %v1649_v32 = vmax.f32 %v1576_v13, %v1637_v45 }
 0x57a   : > { %1677 = vrot.lane.b32.xlu0 %v1649_v32, %s2962_s14  ;;  %v1607_v50 = vpop.permute.xlu0 %1606 }
 0x57b   : > { %v1638_v57 = vsel %vm1632_vm0, %v1607_v50, 0.0 }
 0x57c   : > { %v1650_v34 = vmax.f32 %v1577_v21, %v1638_v57 }
 0x57e   : > { %v1609_v36 = vpop.permute.xlu1 %1608  ;;  %1679 = vrot.lane.b32.xlu0 %v1650_v34, %s2962_s14 }
 0x57f   : > { %v1639_v1 = vsel %vm1632_vm0, %v1609_v36, 0.0 }
 0x580   : > { %v1651_v61 = vmax.f32 %v1578_v31, %v1639_v1 }
 0x582   : > { %1681 = vrot.lane.b32.xlu1 %v1651_v61, %s2962_s14  ;;  %v1611_v9 = vpop.permute.xlu1 %1610 }
 0x583   : > { %v1640_v13 = vsel %vm1632_vm0, %v1611_v9, 0.0 }
 0x584   : > { %v1652_v37 = vmax.f32 %v1579_v44, %v1640_v13 }
 0x586   : > { %1683 = vrot.lane.b32.xlu1 %v1652_v37, %s2962_s14  ;;  %v1613_v16 = vpop.permute.xlu1 %1612 }
 0x587   : > { %v1641_v21 = vsel %vm1632_vm0, %v1613_v16, 0.0 }
 0x588   : > { %v1653_v38 = vmax.f32 %v1580_v58, %v1641_v21 }
 0x58a   : > { %1685 = vrot.lane.b32.xlu1 %v1653_v38, %s2962_s14  ;;  %v1615_v40 = vpop.permute.xlu1 %1614 }
 0x58b   : > { %v1642_v26 = vsel %vm1632_vm0, %v1615_v40, 0.0 }
 0x58c   : > { %v1654_v31 = vmax.f32 %v1581_v6, %v1642_v26 }
 0x58e   : > { %1687 = vrot.lane.b32.xlu1 %v1654_v31, %s2962_s14  ;;  %v1617_v42 = vpop.permute.xlu1 %1616 }
 0x58f   : > { %v1643_v43 = vsel %vm1632_vm0, %v1617_v42, 0.0 }
 0x590   : > { %v1655_v46 = vmax.f32 %v1582_v15, %v1643_v43 }
 0x592   : > { %1689 = vrot.lane.b32.xlu1 %v1655_v46, %s2962_s14  ;;  %v1619_v39 = vpop.permute.xlu1 %1618 }
 0x593   : > { %v1644_v44 = vsel %vm1632_vm0, %v1619_v39, 0.0 }
 0x594   : > { %v1656_v47 = vmax.f32 %v1583_v17, %v1644_v44 }
 0x596   : > { %1691 = vrot.lane.b32.xlu1 %v1656_v47, %s2962_s14 }
 0x5dc   : > { %v1670_v48 = vpop.permute.xlu0 %1669 }
 0x5dd   : > { %v1706_v49 = vsel %vm1705_vm1, %v1670_v48, 0.0 }
 0x5de   : > { %v1718_v51 = vmax.f32 %v1645_v20, %v1706_v49 }
 0x5e0   : > { %1742 = vrot.lane.b32.xlu0 %v1718_v51, %s3686_s22  ;;  %v1672_v53 = vpop.permute.xlu0 %1671 }
 0x5e1   : > { %v1707_v54 = vsel %vm1705_vm1, %v1672_v53, 0.0  ;;  %v1958_v53 = vld [vmem:[%s3661_s7 + $0x48] sm:$0xff] }
 0x5e2   : > { %v1719_v55 = vmax.f32 %v1646_v24, %v1707_v54 }
 0x5e4   : > { %1744 = vrot.lane.b32.xlu0 %v1719_v55, %s3686_s22  ;;  %v1674_v56 = vpop.permute.xlu0 %1673 }
 0x5e5   : > { %v1708_v58 = vsel %vm1705_vm1, %v1674_v56, 0.0 }
 0x5e6   : > { %v1720_v63 = vmax.f32 %v1647_v28, %v1708_v58 }
 0x5e8   : > { %1746 = vrot.lane.b32.xlu0 %v1720_v63, %s3686_s22  ;;  %v1676_v0 = vpop.permute.xlu0 %1675 }
 0x5e9   : > { %v1709_v52 = vsel %vm1705_vm1, %v1676_v0, 0.0 }
 0x5ea   : > { %v1721_v2 = vmax.f32 %v1648_v29, %v1709_v52  ;;  %v1955_v52 = vld [vmem:[%s3661_s7 + $0x30] sm:$0xff] }
 0x5ec   : > { %1748 = vrot.lane.b32.xlu0 %v1721_v2, %s3686_s22  ;;  %v1678_v33 = vpop.permute.xlu0 %1677 }
 0x5ed   : > { %v1710_v3 = vsel %vm1705_vm1, %v1678_v33, 0.0 }
 0x5ee   : > { %v1722_v4 = vmax.f32 %v1649_v32, %v1710_v3  ;;  %v1954_v3 = vld [vmem:[%s3661_s7 + $0x28] sm:$0xff] }
 0x5f0   : > { %1750 = vrot.lane.b32.xlu0 %v1722_v4, %s3686_s22  ;;  %v1680_v5 = vpop.permute.xlu0 %1679 }
 0x5f1   : > { %v1711_v6 = vsel %vm1705_vm1, %v1680_v5, 0.0  ;;  %v1952_v5 = vld [vmem:[%s3661_s7 + $0x18] sm:$0xff] }
 0x5f2   : > { %v1723_v62 = vmax.f32 %v1650_v34, %v1711_v6  ;;  %v1951_v6 = vld [vmem:[%s3661_s7 + $0x10] sm:$0xff] }
 0x5f4   : > { %v1682_v7 = vpop.permute.xlu1 %1681  ;;  %1752 = vrot.lane.b32.xlu0 %v1723_v62, %s3686_s22 }
 0x5f5   : > { %v1712_v8 = vsel %vm1705_vm1, %v1682_v7, 0.0  ;;  %v1949_v7 = vld [vmem:[%s3661_s7] sm:$0xff] }
 0x5f6   : > { %v1724_v10 = vmax.f32 %v1651_v61, %v1712_v8 }
 0x5f8   : > { %1754 = vrot.lane.b32.xlu1 %v1724_v10, %s3686_s22  ;;  %v1684_v11 = vpop.permute.xlu1 %1683 }
 0x5f9   : > { %v1713_v12 = vsel %vm1705_vm1, %v1684_v11, 0.0 }
 0x5fa   : > { %v1725_v14 = vmax.f32 %v1652_v37, %v1713_v12 }
 0x5fc   : > { %1756 = vrot.lane.b32.xlu1 %v1725_v14, %s3686_s22  ;;  %v1686_v15 = vpop.permute.xlu1 %1685 }
 0x5fd   : > { %v1714_v59 = vsel %vm1705_vm1, %v1686_v15, 0.0 }
 0x5fe   : > { %v1726_v60 = vmax.f32 %v1653_v38, %v1714_v59 }
 0x600   : > { %1758 = vrot.lane.b32.xlu1 %v1726_v60, %s3686_s22  ;;  %v1688_v17 = vpop.permute.xlu1 %1687 }
 0x601   : > { %v1715_v18 = vsel %vm1705_vm1, %v1688_v17, 0.0 }
 0x602   : > { %v1727_v19 = vmax.f32 %v1654_v31, %v1715_v18 }
 0x604   : > { %1760 = vrot.lane.b32.xlu1 %v1727_v19, %s3686_s22  ;;  %v1690_v20 = vpop.permute.xlu1 %1689 }
 0x605   : > { %v1716_v22 = vsel %vm1705_vm1, %v1690_v20, 0.0 }
 0x606   : > { %v1728_v23 = vmax.f32 %v1655_v46, %v1716_v22 }
 0x608   : > { %1762 = vrot.lane.b32.xlu1 %v1728_v23, %s3686_s22  ;;  %v1692_v24 = vpop.permute.xlu1 %1691 }
 0x609   : > { %v1717_v25 = vsel %vm1705_vm1, %v1692_v24, 0.0 }
 0x60a   : > { %v3461_v27 = vmax.f32 %v1656_v47, %v1717_v25 }
 0x60c   : > { %1764 = vrot.lane.b32.xlu1 %v3461_v27, %s3686_s22 }
 0x652   : > { %v1743_v28 = vpop.permute.xlu0 %1742 }
 0x653   : > { %v1779_v30 = vsel %vm1778_vm2, %v1743_v28, 0.0 }
 0x654   : > { %v3466_v35 = vmax.f32 %v1718_v51, %v1779_v30  ;;  %v1959_v51 = vld [vmem:[%s3661_s7 + $0x50] sm:$0x7] }
 0x655   : > { %2663 = vmatprep.subr.msk.mxu0 %vm1997_vm3, %v1959_v51  ;;  %2703 = vmatprep.subr.msk.mxu1 %vm1997_vm3, %v1959_v51 }
 0x656   : > { %1815 = vrot.lane.b32.xlu0 %v3466_v35, %s3689_s20  ;;  %v1745_v29 = vpop.permute.xlu0 %1744  ;;  %2664 = vmatpush3.msk.msra.mxu0 %vm1997_vm3, %v1959_v51 }
 0x657   : > { %v1780_v41 = vsel %vm1778_vm2, %v1745_v29, 0.0  ;;  %2665 = vmatprep.subr.mxu0 %v1958_v53  ;;  %2714 = vmatpush3.msk.msra.mxu1 %vm1997_vm3, %v1959_v51 }
 0x658   : > { %v3471_v45 = vmax.f32 %v1719_v55, %v1780_v41  ;;  %v1957_v55 = vld [vmem:[%s3661_s7 + $0x40] sm:$0xff]  ;;  %2666 = vmatpush3.msra.mxu0 %v1958_v53  ;;  %2704 = vmatprep.subr.mxu1 %v1958_v53 }
 0x659   : > { %2667 = vmatprep.subr.mxu0 %v1957_v55  ;;  %2715 = vmatpush3.msra.mxu1 %v1958_v53 }
 0x65a   : > { %1817 = vrot.lane.b32.xlu0 %v3471_v45, %s3689_s20  ;;  %v1747_v32 = vpop.permute.xlu0 %1746  ;;  %2668 = vmatpush3.msra.mxu0 %v1957_v55 }
 0x65b   : > { %v1781_v50 = vsel %vm1778_vm2, %v1747_v32, 0.0  ;;  %2705 = vmatprep.subr.mxu1 %v1957_v55 }
 0x65c   : > { %v3476_v57 = vmax.f32 %v1720_v63, %v1781_v50  ;;  %v1956_v63 = vld [vmem:[%s3661_s7 + $0x38] sm:$0xff]  ;;  %2716 = vmatpush3.msra.mxu1 %v1957_v55 }
 0x65d   : > { %2669 = vmatprep.subr.mxu0 %v1956_v63  ;;  %2706 = vmatprep.subr.mxu1 %v1956_v63 }
 0x65e   : > { %1819 = vrot.lane.b32.xlu0 %v3476_v57, %s3689_s20  ;;  %v1749_v34 = vpop.permute.xlu0 %1748  ;;  %2670 = vmatpush3.msra.mxu0 %v1956_v63 }
 0x65f   : > { %v1782_v36 = vsel %vm1778_vm2, %v1749_v34, 0.0  ;;  %2671 = vmatprep.subr.mxu0 %v1955_v52  ;;  %2717 = vmatpush3.msra.mxu1 %v1956_v63 }
 0x660   : > { %v3481_v1 = vmax.f32 %v1721_v2, %v1782_v36  ;;  %2672 = vmatpush3.msra.mxu0 %v1955_v52  ;;  %2707 = vmatprep.subr.mxu1 %v1955_v52 }
 0x661   : > { %2673 = vmatprep.subr.mxu0 %v1954_v3  ;;  %2718 = vmatpush3.msra.mxu1 %v1955_v52 }
 0x662   : > { %1821 = vrot.lane.b32.xlu0 %v3481_v1, %s3689_s20  ;;  %v1751_v61 = vpop.permute.xlu0 %1750  ;;  %2674 = vmatpush3.msra.mxu0 %v1954_v3 }
 0x663   : > { %v1783_v9 = vsel %vm1778_vm2, %v1751_v61, 0.0  ;;  %2708 = vmatprep.subr.mxu1 %v1954_v3 }
 0x664   : > { %v3486_v13 = vmax.f32 %v1722_v4, %v1783_v9  ;;  %v1953_v4 = vld [vmem:[%s3661_s7 + $0x20] sm:$0xff]  ;;  %2719 = vmatpush3.msra.mxu1 %v1954_v3 }
 0x665   : > { %2675 = vmatprep.subr.mxu0 %v1953_v4  ;;  %2709 = vmatprep.subr.mxu1 %v1953_v4 }
 0x666   : > { %1823 = vrot.lane.b32.xlu0 %v3486_v13, %s3689_s20  ;;  %v1753_v37 = vpop.permute.xlu0 %1752  ;;  %2676 = vmatpush3.msra.mxu0 %v1953_v4 }
 0x667   : > { %v1784_v16 = vsel %vm1778_vm2, %v1753_v37, 0.0  ;;  %2677 = vmatprep.subr.mxu0 %v1952_v5  ;;  %2720 = vmatpush3.msra.mxu1 %v1953_v4 }
 0x668   : > { %v3491_v21 = vmax.f32 %v1723_v62, %v1784_v16  ;;  %2678 = vmatpush3.msra.mxu0 %v1952_v5  ;;  %2710 = vmatprep.subr.mxu1 %v1952_v5  ;;  %v1950_v62 = vld [vmem:[%s3661_s7 + $0x8] sm:$0xff] }
 0x669   : > { %2721 = vmatpush3.msra.mxu1 %v1952_v5  ;;  %2679 = vmatprep.subr.mxu0 %v1951_v6 }
 0x66a   : > { %v1755_v38 = vpop.permute.xlu1 %1754  ;;  %1825 = vrot.lane.b32.xlu0 %v3491_v21, %s3689_s20  ;;  %2711 = vmatprep.subr.mxu1 %v1951_v6 }
 0x66b   : > { %v1785_v40 = vsel %vm1778_vm2, %v1755_v38, 0.0  ;;  %2680 = vmatpush3.msra.mxu0 %v1951_v6  ;;  %2722 = vmatpush3.msra.mxu1 %v1951_v6 }
 0x66c   : > { %v3496_v26 = vmax.f32 %v1724_v10, %v1785_v40  ;;  %2681 = vmatprep.subr.mxu0 %v1950_v62  ;;  %2712 = vmatprep.subr.mxu1 %v1950_v62 }
 0x66d   : > { %2682 = vmatpush3.msra.mxu0 %v1950_v62  ;;  %2723 = vmatpush3.msra.mxu1 %v1950_v62 }
 0x66e   : > { %1827 = vrot.lane.b32.xlu1 %v3496_v26, %s3689_s20  ;;  %v1757_v31 = vpop.permute.xlu1 %1756  ;;  %2683 = vmatprep.subr.mxu0 %v1949_v7 }
 0x66f   : > { %v1786_v42 = vsel %vm1778_vm2, %v1757_v31, 0.0  ;;  %2713 = vmatprep.subr.mxu1 %v1949_v7  ;;  %2684 = vmatpush3.msra.mxu0 %v1949_v7 }
 0x670   : > { %v3501_v43 = vmax.f32 %v1725_v14, %v1786_v42  ;;  %2724 = vmatpush3.msra.mxu1 %v1949_v7 }
 0x672   : > { %1829 = vrot.lane.b32.xlu1 %v3501_v43, %s3689_s20  ;;  %v1759_v46 = vpop.permute.xlu1 %1758 }
 0x673   : > { %v1787_v39 = vsel %vm1778_vm2, %v1759_v46, 0.0 }
 0x674   : > { %v3506_v44 = vmax.f32 %v1726_v60, %v1787_v39 }
 0x676   : > { %1831 = vrot.lane.b32.xlu1 %v3506_v44, %s3689_s20  ;;  %v1761_v47 = vpop.permute.xlu1 %1760 }
 0x677   : > { %v1788_v48 = vsel %vm1778_vm2, %v1761_v47, 0.0 }
 0x678   : > { %v3511_v49 = vmax.f32 %v1727_v19, %v1788_v48 }
 0x67a   : > { %1833 = vrot.lane.b32.xlu1 %v3511_v49, %s3689_s20  ;;  %v1763_v54 = vpop.permute.xlu1 %1762 }
 0x67b   : > { %v1789_v56 = vsel %vm1778_vm2, %v1763_v54, 0.0 }
 0x67c   : > { %v3525_v58 = vmax.f32 %v1728_v23, %v1789_v56 }
 0x67e   : > { %1835 = vrot.lane.b32.xlu1 %v3525_v58, %s3689_s20  ;;  %v1765_v0 = vpop.permute.xlu1 %1764 }
 0x67f   : > { %v1790_v2 = vsel %vm1778_vm2, %v1765_v0, 0.0 }
 0x680   : > { %v3537_v33 = vmax.f32 %v3461_v27, %v1790_v2 }
 0x682   : > { %1837 = vrot.lane.b32.xlu1 %v3537_v33, %s3689_s20 }
 0x6c8   : > { %v1816_v8 = vpop.permute.xlu0 %1815 }
 0x6c9   : > { %v1852_v10 = vsel %vm1851_vm4, %v1816_v8, 0.0 }
 0x6ca   : > { %v1864_v11 = vmax.f32 %v3466_v35, %v1852_v10 }
 0x6cc   : > { %1888 = vrot.lane.b32.xlu0 %v1864_v11, %s3690_s18  ;;  %v1818_v12 = vpop.permute.xlu0 %1817 }
 0x6cd   : > { %v1853_v14 = vsel %vm1851_vm4, %v1818_v12, 0.0 }
 0x6ce   : > { %v1865_v15 = vmax.f32 %v3471_v45, %v1853_v14 }
 0x6d0   : > { %1890 = vrot.lane.b32.xlu0 %v1865_v15, %s3690_s18  ;;  %v1820_v59 = vpop.permute.xlu0 %1819 }
 0x6d1   : > { %v1854_v60 = vsel %vm1851_vm4, %v1820_v59, 0.0 }
 0x6d2   : > { %v1866_v17 = vmax.f32 %v3476_v57, %v1854_v60 }
 0x6d4   : > { %1892 = vrot.lane.b32.xlu0 %v1866_v17, %s3690_s18  ;;  %v1822_v18 = vpop.permute.xlu0 %1821 }
 0x6d5   : > { %v1855_v19 = vsel %vm1851_vm4, %v1822_v18, 0.0 }
 0x6d6   : > { %v1867_v20 = vmax.f32 %v3481_v1, %v1855_v19 }
 0x6d8   : > { %1894 = vrot.lane.b32.xlu0 %v1867_v20, %s3690_s18  ;;  %v1824_v22 = vpop.permute.xlu0 %1823 }
 0x6d9   : > { %v1856_v23 = vsel %vm1851_vm4, %v1824_v22, 0.0 }
 0x6da   : > { %v1868_v24 = vmax.f32 %v3486_v13, %v1856_v23 }
 0x6dc   : > { %1896 = vrot.lane.b32.xlu0 %v1868_v24, %s3690_s18  ;;  %v1826_v25 = vpop.permute.xlu0 %1825 }
 0x6dd   : > { %v1857_v27 = vsel %vm1851_vm4, %v1826_v25, 0.0 }
 0x6de   : > { %v1869_v28 = vmax.f32 %v3491_v21, %v1857_v27 }
 0x6e0   : > { %v1828_v30 = vpop.permute.xlu1 %1827  ;;  %1898 = vrot.lane.b32.xlu0 %v1869_v28, %s3690_s18 }
 0x6e1   : > { %v1858_v35 = vsel %vm1851_vm4, %v1828_v30, 0.0 }
 0x6e2   : > { %v1870_v29 = vmax.f32 %v3496_v26, %v1858_v35 }
 0x6e4   : > { %1900 = vrot.lane.b32.xlu1 %v1870_v29, %s3690_s18  ;;  %v1830_v41 = vpop.permute.xlu1 %1829 }
 0x6e5   : > { %v1859_v45 = vsel %vm1851_vm4, %v1830_v41, 0.0 }
 0x6e6   : > { %v1871_v32 = vmax.f32 %v3501_v43, %v1859_v45 }
 0x6e8   : > { %1902 = vrot.lane.b32.xlu1 %v1871_v32, %s3690_s18  ;;  %v1832_v50 = vpop.permute.xlu1 %1831 }
 0x6e9   : > { %v1860_v57 = vsel %vm1851_vm4, %v1832_v50, 0.0 }
 0x6ea   : > { %v1872_v34 = vmax.f32 %v3506_v44, %v1860_v57 }
 0x6ec   : > { %1904 = vrot.lane.b32.xlu1 %v1872_v34, %s3690_s18  ;;  %v1834_v36 = vpop.permute.xlu1 %1833 }
 0x6ed   : > { %v1861_v1 = vsel %vm1851_vm4, %v1834_v36, 0.0 }
 0x6ee   : > { %v1873_v61 = vmax.f32 %v3511_v49, %v1861_v1 }
 0x6f0   : > { %1906 = vrot.lane.b32.xlu1 %v1873_v61, %s3690_s18  ;;  %v1836_v9 = vpop.permute.xlu1 %1835 }
 0x6f1   : > { %v1862_v13 = vsel %vm1851_vm4, %v1836_v9, 0.0 }
 0x6f2   : > { %v1874_v37 = vmax.f32 %v3525_v58, %v1862_v13 }
 0x6f4   : > { %1908 = vrot.lane.b32.xlu1 %v1874_v37, %s3690_s18  ;;  %v1838_v16 = vpop.permute.xlu1 %1837 }
 0x6f5   : > { %v1863_v21 = vsel %vm1851_vm4, %v1838_v16, 0.0 }
 0x6f6   : > { %v1875_v38 = vmax.f32 %v3537_v33, %v1863_v21 }
 0x6f8   : > { %1910 = vrot.lane.b32.xlu1 %v1875_v38, %s3690_s18 }
 0x73e   : > { %v1889_v40 = vpop.permute.xlu0 %1888 }
 0x73f   : > { %v1925_v26 = vsel %vm1924_vm5, %v1889_v40, 0.0 }
 0x740   : > { %v1937_v31 = vmax.f32 %v1864_v11, %v1925_v26 }
 0x742   : > { %2685 = vmatprep.mubr.msk.f32.mxu0 %vm1960_vm6, %v1937_v31  ;;  %v1891_v42 = vpop.permute.xlu0 %1890 }
 0x743   : > { %v1926_v43 = vsel %vm1924_vm5, %v1891_v42, 0.0 }
 0x744   : > { %v1938_v46 = vmax.f32 %v1865_v15, %v1926_v43 }
 0x746   : > { %2686 = vmatmul.mubr.msk.f32.vlgmr.msra.gmra.mxu0 %vm1960_vm6, %v1938_v46  ;;  %v1893_v39 = vpop.permute.xlu0 %1892 }
 0x747   : > { %v1927_v44 = vsel %vm1924_vm5, %v1893_v39, 0.0 }
 0x748   : > { %v1939_v47 = vmax.f32 %v1866_v17, %v1927_v44 }
 0x74a   : > { %2688 = vmatprep.mubr.msk.f32.mxu0 %vm1960_vm6, %v1939_v47  ;;  %v1895_v48 = vpop.permute.xlu0 %1894 }
 0x74b   : > { %v1928_v49 = vsel %vm1924_vm5, %v1895_v48, 0.0 }
 0x74c   : > { %v1940_v51 = vmax.f32 %v1867_v20, %v1928_v49 }
 0x74e   : > { %2689 = vmatmul.mubr.msk.f32.gmra.mxu0 %vm1960_vm6, %v1940_v51  ;;  %v1897_v53 = vpop.permute.xlu0 %1896 }
 0x74f   : > { %v1929_v54 = vsel %vm1924_vm5, %v1897_v53, 0.0 }
 0x750   : > { %v1941_v55 = vmax.f32 %v1868_v24, %v1929_v54 }
 0x752   : > { %2691 = vmatprep.mubr.msk.f32.mxu0 %vm1960_vm6, %v1941_v55  ;;  %v1899_v56 = vpop.permute.xlu0 %1898 }
 0x753   : > { %v1930_v58 = vsel %vm1924_vm5, %v1899_v56, 0.0 }
 0x754   : > { %v1942_v63 = vmax.f32 %v1869_v28, %v1930_v58 }
 0x756   : > { %v1901_v0 = vpop.permute.xlu1 %1900  ;;  %2692 = vmatmul.mubr.msk.f32.gmra.mxu0 %vm1960_vm6, %v1942_v63 }
 0x757   : > { %v1931_v52 = vsel %vm1924_vm5, %v1901_v0, 0.0 }
 0x758   : > { %v1943_v2 = vmax.f32 %v1870_v29, %v1931_v52 }
 0x75a   : > { %2694 = vmatprep.mubr.msk.f32.mxu1 %vm1960_vm6, %v1943_v2  ;;  %v1903_v33 = vpop.permute.xlu1 %1902 }
 0x75b   : > { %v1932_v3 = vsel %vm1924_vm5, %v1903_v33, 0.0 }
 0x75c   : > { %v1944_v4 = vmax.f32 %v1871_v32, %v1932_v3 }
 0x75e   : > { %2695 = vmatmul.mubr.msk.f32.vlgmr.msra.gmra.mxu1 %vm1960_vm6, %v1944_v4  ;;  %v1905_v5 = vpop.permute.xlu1 %1904 }
 0x75f   : > { %v1933_v6 = vsel %vm1924_vm5, %v1905_v5, 0.0 }
 0x760   : > { %v1945_v62 = vmax.f32 %v1872_v34, %v1933_v6 }
 0x762   : > { %2697 = vmatprep.mubr.msk.f32.mxu1 %vm1960_vm6, %v1945_v62  ;;  %v1907_v7 = vpop.permute.xlu1 %1906 }
 0x763   : > { %v1934_v8 = vsel %vm1924_vm5, %v1907_v7, 0.0 }
 0x764   : > { %v1946_v10 = vmax.f32 %v1873_v61, %v1934_v8 }
 0x766   : > { %2698 = vmatmul.mubr.msk.f32.gmra.mxu1 %vm1960_vm6, %v1946_v10  ;;  %v1909_v11 = vpop.permute.xlu1 %1908 }
 0x767   : > { %v1935_v12 = vsel %vm1924_vm5, %v1909_v11, 0.0 }
 0x768   : > { %v1947_v14 = vmax.f32 %v1874_v37, %v1935_v12 }
 0x76a   : > { %2700 = vmatprep.mubr.msk.f32.mxu1 %vm1960_vm6, %v1947_v14  ;;  %v1911_v15 = vpop.permute.xlu1 %1910 }
 0x76b   : > { %v1936_v59 = vsel %vm1924_vm5, %v1911_v15, 0.0 }
 0x76c   : > { %v1948_v60 = vmax.f32 %v1875_v38, %v1936_v59 }
 0x76e   : > { %2701 = vmatmul.mubr.msk.f32.gmra.mxu1 %vm1960_vm6, %v1948_v60 }
 0x806   : > { %v2687_v17 = vpop.f32.mrf.mxu0 }
 0x807   : > { %2128 = vst.msk [vmem:[%s481_s25 + $0x8] sm:$0xff] %vm2126_vm7, %v2687_v17 }
 0x808   : > { %v2067_v18 = vpop.f32.mrf.mxu0 }
 0x809   : > { %2127 = vst.msk [vmem:[%s481_s25] sm:$0xff] %vm2126_vm7, %v2067_v18 }
 0x80e   : > { %v2690_v19 = vpop.f32.mrf.mxu0 }
 0x80f   : > { %2130 = vst.msk [vmem:[%s481_s25 + $0x18] sm:$0xff] %vm2126_vm7, %v2690_v19 }
 0x810   : > { %v2077_v20 = vpop.f32.mrf.mxu0 }
 0x811   : > { %2129 = vst.msk [vmem:[%s481_s25 + $0x10] sm:$0xff] %vm2126_vm7, %v2077_v20 }
 0x816   : > { %v2693_v22 = vpop.f32.mrf.mxu0 }
 0x817   : > { %2132 = vst.msk [vmem:[%s481_s25 + $0x28] sm:$0xff] %vm2126_vm7, %v2693_v22 }
 0x818   : > { %v2087_v23 = vpop.f32.mrf.mxu0 }
 0x819   : > { %2131 = vst.msk [vmem:[%s481_s25 + $0x20] sm:$0xff] %vm2126_vm7, %v2087_v23 }
 0x81e   : > { %v2696_v24 = vpop.f32.mrf.mxu1 }
 0x81f   : > { %2134 = vst.msk [vmem:[%s481_s25 + $0x38] sm:$0xff] %vm2126_vm7, %v2696_v24 }
 0x820   : > { %v2097_v25 = vpop.f32.mrf.mxu1 }
 0x821   : > { %2133 = vst.msk [vmem:[%s481_s25 + $0x30] sm:$0xff] %vm2126_vm7, %v2097_v25 }
 0x826   : > { %v2699_v27 = vpop.f32.mrf.mxu1 }
 0x827   : > { %2136 = vst.msk [vmem:[%s481_s25 + $0x48] sm:$0xff] %vm2126_vm7, %v2699_v27 }
 0x828   : > { %v2107_v28 = vpop.f32.mrf.mxu1 }
 0x829   : > { %2135 = vst.msk [vmem:[%s481_s25 + $0x40] sm:$0xff] %vm2126_vm7, %v2107_v28 }
 0x82e   : > { %v2702_v30 = vpop.f32.mrf.mxu1 }
 0x82f   : > { %2138 = vst.msk [vmem:[%s481_s25 + $0x58] sm:$0xff] %vm2126_vm7, %v2702_v30 }
 0x830   : > { %v2117_v35 = vpop.f32.mrf.mxu1 }
 0x831   : > { %2137 = vst.msk [vmem:[%s481_s25 + $0x50] sm:$0xff] %vm2126_vm7, %v2117_v35 }
 0x832 PF: > { %s21_s10 = sadd.s32 1, %s2953_s10   ;;  %s3691_s27 = smov %s2937_s28 }
 0x833   : > { %p18_p7 = scmp.ge.s32.totalorder %s21_s10, 5   ;;  %s3692_s28 = smov %s2941_s29 }
 0x834   : > { %s3693_s29 = smov %s3065_s16  ;;  %s3694_s30 = smov %s2949_s9 }
 0x835   : > { %s3695_s9 = smov %s3697_s12  ;;  %20 = sbr.rel (!%p18_p7) target bundleno = 4 (0x4), region = 110 }
 0x83a   :  { %2168 = vsyncpa [#allocation3], 1 }
 0x83b   :  { %2170 = vsyncpa [#allocation3 + $0x1], 1 }

</bundles_post_ra>
